<compile_context>
chip_gen: v5e
topology: v5e:2x2
jax: 0.10.0
libtpu: 0.0.40
codegen_flags: <defaults>
</compile_context>

<pallas_src>
import functools

import jax
import jax.numpy as jnp
from jax.experimental import pallas as pl
from jax.experimental.pallas import tpu as pltpu

K = 4              # kernel size of both ConvTranspose2d layers
PAD = K - 1 - 1    # equivalent direct-conv padding = k - 1 - p = 2
BN_EPS = 1e-5      # torch.nn.BatchNorm2d default


def _fused_deconv_block_kernel(
    x_ref,                                        # (B*Hp1, W*Cin)   row-padded, lane-packed
    w1_ref, b1_ref, gb1_ref, s1_ref, st1_ref,     # stage-1 packed params (VMEM)
    w2_hbm,                                       # (K, Wo1*Cmid, Wo2*Cout) stage-2 banded W (HBM)
    b2_ref, gb2_ref, s2_ref, st2_ref,             # small stage-2 params (VMEM)
    o_ref,                                        # (B*Ho2, Wo2*Cout)
    xpad2_ref,                                    # (B*Hp2, Wo1*Cmid) scratch
    w2_ref,                                       # VMEM scratch for prefetched stage-2 weights
    dma_sem,                                      # DMA semaphore (1,)
    *, B, H, W, Cin, Cmid, Cout,
):
    Ho1, Wo1 = H + 1, W + 1
    Ho2, Wo2 = Ho1 + 1, Wo1 + 1
    Hp1, Hp2 = H + 2 * PAD, Ho1 + 2 * PAD
    Mfull1 = (B - 1) * Hp1 + Ho1          # rows covering every batch's Ho output rows
    Mfull2 = (B - 1) * Hp2 + Ho2

    # Kick off the stage-2 weight DMA (HBM -> VMEM) so it overlaps stage-1 compute.
    w2_copy = pltpu.make_async_copy(w2_hbm, w2_ref, dma_sem.at[0])
    w2_copy.start()

    def stage(src_ref, w_ref, b_ref, gb_ref, s_ref, st_ref, Hp, Ho, Wo, C_out, Mfull):
        """Direct conv (K banded MXU matmuls, batch folded into M) + single-pass BN + ReLU.

        src_ref : (Mfull+K-1, Win*C_in) row-padded activations (per-batch blocks of Hp rows)
        w_ref   : (K, Win*C_in, Wo*C_out) banded per-ky weights (kx taps + lane padding folded in)
        b_ref   : (1, Wo*C_out) conv bias tiled over W
        gb_ref  : (2, C_out) = [gamma; beta]
        s_ref   : (Wo*C_out, C_out) lane->channel selector; st_ref: its transpose
        Returns (Mfull, Wo*C_out); rows [b*Hp, b*Hp+Ho) are batch b's valid output rows.
        """
        # K consecutive acc += dot into a single f32 accumulator.
        acc = jnp.dot(src_ref[0:Mfull, :], w_ref[0], preferred_element_type=jnp.float32)
        for ky in range(1, K):
            acc = acc + jnp.dot(src_ref[ky:ky + Mfull, :], w_ref[ky],
                                preferred_element_type=jnp.float32)
        acc = acc + b_ref[...]

        # Single-pass BatchNorm stats (training mode, biased variance) over valid rows only.
        r = jax.lax.broadcasted_iota(jnp.int32, (Mfull, 1), 0)
        valid = (r >= 0) & (r < Ho)
        for b in range(1, B):
            valid = valid | ((r >= b * Hp) & (r < b * Hp + Ho))
        masked = jnp.where(valid, acc, 0.0)
        stats = jnp.concatenate([masked.sum(axis=0, keepdims=True),
                                 (masked * masked).sum(axis=0, keepdims=True)], axis=0)
        inv_n = 1.0 / float(B * Ho * Wo)
        stats_c = jnp.dot(stats, s_ref[...], preferred_element_type=jnp.float32) * inv_n  # (2,C)
        mean_c = stats_c[0:1]
        var_c = stats_c[1:2] - mean_c * mean_c
        # TODO(synk): single-pass E[x^2]-E[x]^2 variance can cancel if |mean| >> std.
        scale_c = gb_ref[0:1] * jax.lax.rsqrt(var_c + BN_EPS)       # rsqrt -> EUP slot
        shift_c = gb_ref[1:2] - mean_c * scale_c
        ss = jnp.concatenate([scale_c, shift_c], axis=0)                               # (2, C)
        ss_l = jnp.dot(ss, st_ref[...], preferred_element_type=jnp.float32)            # (2, lanes)
        # Fused normalize + affine + ReLU in one elementwise pass.
        return jnp.maximum(acc * ss_l[0:1] + ss_l[1:2], 0.0)

    # ---- stage 1 (input rows already zero-padded by the wrapper) ----
    y1 = stage(x_ref, w1_ref, b1_ref, gb1_ref, s1_ref, st1_ref,
               Hp1, Ho1, Wo1, Cmid, Mfull1)

    # ---- inter-stage: intermediate stays on-chip; zero only the halo rows of the scratch ----
    halo = jnp.zeros((PAD, Wo1 * Cmid), jnp.float32)
    for b in range(B):
        r0 = b * Hp2
        xpad2_ref[r0:r0 + PAD, :] = halo
        xpad2_ref[r0 + PAD:r0 + PAD + Ho1, :] = y1[b * Hp1:b * Hp1 + Ho1, :]
        xpad2_ref[r0 + PAD + Ho1:r0 + Hp2, :] = halo

    # ---- stage 2 (wait for the prefetched banded weights, overlapped with stage 1) ----
    w2_copy.wait()
    y2 = stage(xpad2_ref, w2_ref, b2_ref, gb2_ref, s2_ref, st2_ref,
               Hp2, Ho2, Wo2, Cout, Mfull2)

    for b in range(B):
        o_ref[b * Ho2:(b + 1) * Ho2, :] = y2[b * Hp2:b * Hp2 + Ho2, :].astype(o_ref.dtype)


def _pack_stage_params(wt, bias, gamma, beta, W_in):
    """Pack one ConvTranspose2d+BN stage into banded per-ky weights for the lane-packed kernel.

    wt: (Cin, Cout, K, K) torch ConvTranspose2d weight layout.
    Returns:
      w_band (K, W_in*Cin, Wo*Cout): per-ky banded weight — the kx taps and the left/right zero
                                     padding are encoded in the band structure,
      bias_l (1, Wo*Cout), gb (2, Cout)=[gamma;beta], sel (Wo*Cout, Cout), sel.T.
    """
    Cin, Cout = wt.shape[0], wt.shape[1]
    Wo = W_in + 1
    # ConvTranspose2d(k, s=1, p) == Conv2d(k, pad=k-1-p) with flipped / channel-swapped weight.
    w_eff = jnp.flip(wt, axis=(2, 3)).transpose(2, 3, 0, 1)             # (K, K, Cin, Cout)
    w_idx = jnp.arange(W_in)[:, None]                                   # input column
    ox_idx = jnp.arange(Wo)[None, :]                                    # output column
    kx = w_idx - ox_idx + PAD                                           # (W_in, Wo)
    in_band = ((kx >= 0) & (kx < K)).astype(wt.dtype)
    band = w_eff[:, jnp.clip(kx, 0, K - 1), :, :]                       # (K, W_in, Wo, Cin, Cout)
    band = band * in_band[None, :, :, None, None]
    w_band = band.transpose(0, 1, 3, 2, 4).reshape(K, W_in * Cin, Wo * Cout)
    sel = jnp.tile(jnp.eye(Cout, dtype=jnp.float32), (Wo, 1))           # (Wo*Cout, Cout)
    bias_l = jnp.tile(bias.reshape(1, Cout), (1, Wo))                   # (1, Wo*Cout)
    gb = jnp.stack([gamma, beta], axis=0)                               # (2, Cout)
    return w_band, bias_l, gb, sel, sel.T


def pack_deconv_block_params(params, W):
    """One-time packing at parameter-load time (kept OUT of the jitted per-call forward)."""
    Wo1 = W + 1
    w1b, b1l, gb1, s1, st1 = _pack_stage_params(params["w1"], params["b1"],
                                                params["g1"], params["be1"], W)
    w2b, b2l, gb2, s2, st2 = _pack_stage_params(params["w2"], params["b2"],
                                                params["g2"], params["be2"], Wo1)
    return dict(w1b=w1b, b1l=b1l, gb1=gb1, s1=s1, st1=st1,
                w2b=w2b, b2l=b2l, gb2=gb2, s2=s2, st2=st2)


@jax.jit
def deconv_block_forward(x_nchw, packed):
    """DeconvBlock.forward.  x_nchw: (B, in_ch, H, W) -> (B, out_ch, H+2, W+2)."""
    B, Cin, H, W = x_nchw.shape
    Cmid = packed["gb1"].shape[1]
    Cout = packed["gb2"].shape[1]
    Ho1, Wo1 = H + 1, W + 1
    Ho2, Wo2 = Ho1 + 1, Wo1 + 1
    Hp1, Hp2 = H + 2 * PAD, Ho1 + 2 * PAD

    # NCHW -> row-padded, lane-packed (B*Hp1, W*Cin); the pad fuses into the layout copy.
    x_nhwc = jnp.transpose(x_nchw, (0, 2, 3, 1))
    x2d = jnp.pad(x_nhwc, ((0, 0), (PAD, PAD), (0, 0), (0, 0))).reshape(B * Hp1, W * Cin)

    kernel = functools.partial(_fused_deconv_block_kernel,
                               B=B, H=H, W=W, Cin=Cin, Cmid=Cmid, Cout=Cout)

    vmem = pl.BlockSpec(memory_space=pltpu.MemorySpace.VMEM)
    hbm = pl.BlockSpec(memory_space=pl.ANY)
    Mfull1 = (B - 1) * Hp1 + Ho1
    Mfull2 = (B - 1) * Hp2 + Ho2
    flops = 2 * K * (Mfull1 * (W * Cin) * (Wo1 * Cmid) + Mfull2 * (Wo1 * Cmid) * (Wo2 * Cout))
    bytes_accessed = 4 * (x2d.size + packed["w1b"].size + packed["w2b"].size
                          + B * Ho2 * Wo2 * Cout)

    out = pl.pallas_call(
        kernel,
        out_shape=jax.ShapeDtypeStruct((B * Ho2, Wo2 * Cout), jnp.float32),
        in_specs=[vmem] * 6 + [hbm] + [vmem] * 4,
        out_specs=vmem,
        scratch_shapes=[
            pltpu.VMEM((B * Hp2, Wo1 * Cmid), jnp.float32),      # padded stage-2 input
            pltpu.VMEM(packed["w2b"].shape, jnp.float32),        # prefetched stage-2 weights
            pltpu.SemaphoreType.DMA((1,)),
        ],
        compiler_params=pltpu.CompilerParams(vmem_limit_bytes=32 * 1024 * 1024),
        cost_estimate=pl.CostEstimate(flops=flops, transcendentals=2 * (Cmid + Cout),
                                      bytes_accessed=bytes_accessed),
    )(x2d, packed["w1b"], packed["b1l"], packed["gb1"], packed["s1"], packed["st1"],
      packed["w2b"], packed["b2l"], packed["gb2"], packed["s2"], packed["st2"])

    y = out.reshape(B, Ho2, Wo2, Cout)          # free row-major un-flatten
    return jnp.transpose(y, (0, 3, 1, 2))       # NHWC -> NCHW


# ---------- pure-JAX reference (for correctness check only) ----------
def _ref_stage(x_nhwc, wt, bias, gamma, beta):
    w_eff = jnp.flip(wt, axis=(2, 3)).transpose(2, 3, 0, 1)
    xpad = jnp.pad(x_nhwc, ((0, 0), (PAD, PAD), (PAD, PAD), (0, 0)))
    y = jax.lax.conv_general_dilated(
        xpad, w_eff, window_strides=(1, 1), padding="VALID",
        dimension_numbers=("NHWC", "HWIO", "NHWC"),
        precision=jax.lax.Precision.HIGHEST) + bias
    mean = y.mean(axis=(0, 1, 2), keepdims=True)
    var = jnp.square(y - mean).mean(axis=(0, 1, 2), keepdims=True)
    y = (y - mean) * jax.lax.rsqrt(var + BN_EPS) * gamma + beta
    return jnp.maximum(y, 0.0)


def _ref_forward(x_nchw, params):
    x = jnp.transpose(x_nchw, (0, 2, 3, 1))
    x = _ref_stage(x, params["w1"], params["b1"], params["g1"], params["be1"])
    x = _ref_stage(x, params["w2"], params["b2"], params["g2"], params["be2"])
    return jnp.transpose(x, (0, 3, 1, 2))


if __name__ == "__main__":
    B, in_ch, out_ch, H, W = 2, 4, 4, 16, 16
    mid = 2 * out_ch

    key = jax.random.PRNGKey(0)
    ks = jax.random.split(key, 5)
    x = jax.random.normal(ks[0], (B, in_ch, H, W), jnp.float32)

    # Deterministic synthetic parameters (shapes from the module __init__).
    params = {
        # ConvTranspose2d weight layout: (in_ch, out_ch, kH, kW)
        "w1": 0.1 * jax.random.normal(ks[1], (in_ch, mid, K, K), jnp.float32),
        "b1": 0.1 * jax.random.normal(ks[2], (mid,), jnp.float32),
        "g1": jnp.ones((mid,), jnp.float32),       # BatchNorm2d default init
        "be1": jnp.zeros((mid,), jnp.float32),
        "w2": 0.1 * jax.random.normal(ks[3], (mid, out_ch, K, K), jnp.float32),
        "b2": 0.1 * jax.random.normal(ks[4], (out_ch,), jnp.float32),
        "g2": jnp.ones((out_ch,), jnp.float32),
        "be2": jnp.zeros((out_ch,), jnp.float32),
    }

    # One-time packing (banded per-ky weights, selectors) — outside the jitted forward.
    packed = jax.block_until_ready(pack_deconv_block_params(params, W))

    y = jax.block_until_ready(deconv_block_forward(x, packed))
    assert y.shape == (B, out_ch, H + 2, W + 2), y.shape

    y_ref = jax.block_until_ready(_ref_forward(x, params))
    assert bool(jnp.allclose(y, y_ref, atol=2e-4, rtol=2e-4)), "mismatch vs JAX reference"

    print("KERNEL_OK")
</pallas_src>

<mosaic_0001>
module attributes {stable_mosaic.version = 11 : i64} {
  func.func @_fused_deconv_block_kernel(%arg0: memref<40x64xf32, #tpu.memory_space<vmem>>, %arg1: memref<4x64x136xf32, #tpu.memory_space<vmem>>, %arg2: memref<1x136xf32, #tpu.memory_space<vmem>>, %arg3: memref<2x8xf32, #tpu.memory_space<vmem>>, %arg4: memref<136x8xf32, #tpu.memory_space<vmem>>, %arg5: memref<8x136xf32, #tpu.memory_space<vmem>>, %arg6: memref<4x136x72xf32, #tpu.memory_space<any>>, %arg7: memref<1x72xf32, #tpu.memory_space<vmem>>, %arg8: memref<2x4xf32, #tpu.memory_space<vmem>>, %arg9: memref<72x4xf32, #tpu.memory_space<vmem>>, %arg10: memref<4x72xf32, #tpu.memory_space<vmem>>, %arg11: memref<36x72xf32, #tpu.memory_space<vmem>>, %arg12: memref<42x136xf32, #tpu.memory_space<vmem>>, %arg13: memref<4x136x72xf32, #tpu.memory_space<vmem>>, %arg14: memref<1x!tpu.dma_semaphore, #tpu.memory_space<semaphore_mem>>) attributes {dimension_semantics = [], scalar_prefetch = 0 : i64, scratch_operands = 3 : i64, tpu.core_type = #tpu.core_type<tc>} {
    %c0_i32 = arith.constant 0 : i32
    %0 = tpu.memref_slice %arg14[%c0_i32] : memref<1x!tpu.dma_semaphore, #tpu.memory_space<semaphore_mem>> -> memref<1x!tpu.dma_semaphore, #tpu.memory_space<semaphore_mem>>
    %1 = tpu.memref_squeeze %0 : memref<1x!tpu.dma_semaphore, #tpu.memory_space<semaphore_mem>> -> memref<!tpu.dma_semaphore, #tpu.memory_space<semaphore_mem>>
    tpu.enqueue_dma source(%arg6 : memref<4x136x72xf32, #tpu.memory_space<any>>) target(%arg13 : memref<4x136x72xf32, #tpu.memory_space<vmem>>) target_semaphore(%1 : memref<!tpu.dma_semaphore, #tpu.memory_space<semaphore_mem>>)
    %c0 = arith.constant 0 : index
    %c0_0 = arith.constant 0 : index
    %2 = vector.load %arg0[%c0, %c0_0] : memref<40x64xf32, #tpu.memory_space<vmem>>, vector<37x64xf32>
    %c0_1 = arith.constant 0 : index
    %c0_2 = arith.constant 0 : index
    %c0_3 = arith.constant 0 : index
    %3 = vector.load %arg1[%c0_1, %c0_2, %c0_3] : memref<4x64x136xf32, #tpu.memory_space<vmem>>, vector<1x64x136xf32>
    %4 = vector.shape_cast %3 : vector<1x64x136xf32> to vector<64x136xf32>
    %cst = arith.constant dense<0.000000e+00> : vector<37x136xf32>
    %5 = tpu.matmul %2, %4, %cst {dimension_numbers = #tpu.dot_dimension_numbers<[1], [0], [0], [1], [0, 0, 1, 1], [], []>} : vector<37x64xf32>, vector<64x136xf32>, vector<37x136xf32> -> vector<37x136xf32>
    %c1 = arith.constant 1 : index
    %c0_4 = arith.constant 0 : index
    %6 = vector.load %arg0[%c1, %c0_4] : memref<40x64xf32, #tpu.memory_space<vmem>>, vector<37x64xf32>
    %c1_5 = arith.constant 1 : index
    %c0_6 = arith.constant 0 : index
    %c0_7 = arith.constant 0 : index
    %7 = vector.load %arg1[%c1_5, %c0_6, %c0_7] : memref<4x64x136xf32, #tpu.memory_space<vmem>>, vector<1x64x136xf32>
    %8 = vector.shape_cast %7 : vector<1x64x136xf32> to vector<64x136xf32>
    %cst_8 = arith.constant dense<0.000000e+00> : vector<37x136xf32>
    %9 = tpu.matmul %6, %8, %cst_8 {dimension_numbers = #tpu.dot_dimension_numbers<[1], [0], [0], [1], [0, 0, 1, 1], [], []>} : vector<37x64xf32>, vector<64x136xf32>, vector<37x136xf32> -> vector<37x136xf32>
    %10 = arith.addf %5, %9 : vector<37x136xf32>
    %c2 = arith.constant 2 : index
    %c0_9 = arith.constant 0 : index
    %11 = vector.load %arg0[%c2, %c0_9] : memref<40x64xf32, #tpu.memory_space<vmem>>, vector<37x64xf32>
    %c2_10 = arith.constant 2 : index
    %c0_11 = arith.constant 0 : index
    %c0_12 = arith.constant 0 : index
    %12 = vector.load %arg1[%c2_10, %c0_11, %c0_12] : memref<4x64x136xf32, #tpu.memory_space<vmem>>, vector<1x64x136xf32>
    %13 = vector.shape_cast %12 : vector<1x64x136xf32> to vector<64x136xf32>
    %cst_13 = arith.constant dense<0.000000e+00> : vector<37x136xf32>
    %14 = tpu.matmul %11, %13, %cst_13 {dimension_numbers = #tpu.dot_dimension_numbers<[1], [0], [0], [1], [0, 0, 1, 1], [], []>} : vector<37x64xf32>, vector<64x136xf32>, vector<37x136xf32> -> vector<37x136xf32>
    %15 = arith.addf %10, %14 : vector<37x136xf32>
    %c3 = arith.constant 3 : index
    %c0_14 = arith.constant 0 : index
    %16 = vector.load %arg0[%c3, %c0_14] : memref<40x64xf32, #tpu.memory_space<vmem>>, vector<37x64xf32>
    %c3_15 = arith.constant 3 : index
    %c0_16 = arith.constant 0 : index
    %c0_17 = arith.constant 0 : index
    %17 = vector.load %arg1[%c3_15, %c0_16, %c0_17] : memref<4x64x136xf32, #tpu.memory_space<vmem>>, vector<1x64x136xf32>
    %18 = vector.shape_cast %17 : vector<1x64x136xf32> to vector<64x136xf32>
    %cst_18 = arith.constant dense<0.000000e+00> : vector<37x136xf32>
    %19 = tpu.matmul %16, %18, %cst_18 {dimension_numbers = #tpu.dot_dimension_numbers<[1], [0], [0], [1], [0, 0, 1, 1], [], []>} : vector<37x64xf32>, vector<64x136xf32>, vector<37x136xf32> -> vector<37x136xf32>
    %20 = arith.addf %15, %19 : vector<37x136xf32>
    %c0_19 = arith.constant 0 : index
    %c0_20 = arith.constant 0 : index
    %21 = vector.load %arg2[%c0_19, %c0_20] : memref<1x136xf32, #tpu.memory_space<vmem>>, vector<1x136xf32>
    %22 = vector.broadcast %21 : vector<1x136xf32> to vector<37x136xf32>
    %23 = arith.addf %20, %22 : vector<37x136xf32>
    %24 = tpu.iota {dimensions = array<i32: 0>} : vector<37x1xi32>
    %c0_i32_21 = arith.constant 0 : i32
    %25 = vector.broadcast %c0_i32_21 : i32 to vector<37x1xi32>
    %26 = arith.cmpi sge, %24, %25 : vector<37x1xi32>
    %c17_i32 = arith.constant 17 : i32
    %27 = vector.broadcast %c17_i32 : i32 to vector<37x1xi32>
    %28 = arith.cmpi slt, %24, %27 : vector<37x1xi32>
    %29 = arith.andi %26, %28 : vector<37x1xi1>
    %c20_i32 = arith.constant 20 : i32
    %30 = vector.broadcast %c20_i32 : i32 to vector<37x1xi32>
    %31 = arith.cmpi sge, %24, %30 : vector<37x1xi32>
    %c37_i32 = arith.constant 37 : i32
    %32 = vector.broadcast %c37_i32 : i32 to vector<37x1xi32>
    %33 = arith.cmpi slt, %24, %32 : vector<37x1xi32>
    %34 = arith.andi %31, %33 : vector<37x1xi1>
    %35 = arith.ori %29, %34 : vector<37x1xi1>
    %cst_22 = arith.constant 0.000000e+00 : f32
    %36 = vector.shape_cast %35 : vector<37x1xi1> to vector<37x1xi1>
    %37 = vector.broadcast %36 : vector<37x1xi1> to vector<37x136xi1>
    %38 = vector.broadcast %cst_22 : f32 to vector<37x136xf32>
    %39 = arith.select %37, %23, %38 : vector<37x136xi1>, vector<37x136xf32>
    %cst_23 = arith.constant dense<0.000000e+00> : vector<136xf32>
    %40 = vector.multi_reduction <add>, %39, %cst_23 [0] : vector<37x136xf32> to vector<136xf32>
    %41 = vector.shape_cast %40 : vector<136xf32> to vector<1x136xf32>
    %42 = arith.mulf %39, %39 : vector<37x136xf32>
    %cst_24 = arith.constant dense<0.000000e+00> : vector<136xf32>
    %43 = vector.multi_reduction <add>, %42, %cst_24 [0] : vector<37x136xf32> to vector<136xf32>
    %44 = vector.shape_cast %43 : vector<136xf32> to vector<1x136xf32>
    %45 = tpu.concatenate %41, %44 in 0 : vector<1x136xf32>, vector<1x136xf32> -> vector<2x136xf32>
    %c0_25 = arith.constant 0 : index
    %c0_26 = arith.constant 0 : index
    %46 = vector.load %arg4[%c0_25, %c0_26] : memref<136x8xf32, #tpu.memory_space<vmem>>, vector<136x8xf32>
    %cst_27 = arith.constant dense<0.000000e+00> : vector<2x8xf32>
    %47 = tpu.matmul %45, %46, %cst_27 {dimension_numbers = #tpu.dot_dimension_numbers<[1], [0], [0], [1], [0, 0, 1, 1], [], []>} : vector<2x136xf32>, vector<136x8xf32>, vector<2x8xf32> -> vector<2x8xf32>
    %cst_28 = arith.constant 0.00173010386 : f32
    %48 = vector.broadcast %cst_28 : f32 to vector<2x8xf32>
    %49 = arith.mulf %47, %48 : vector<2x8xf32>
    %50 = vector.extract_strided_slice %49 {offsets = [0, 0], sizes = [1, 8], strides = [1, 1]} : vector<2x8xf32> to vector<1x8xf32>
    %51 = vector.extract_strided_slice %49 {offsets = [1, 0], sizes = [1, 8], strides = [1, 1]} : vector<2x8xf32> to vector<1x8xf32>
    %52 = arith.mulf %50, %50 : vector<1x8xf32>
    %53 = arith.subf %51, %52 : vector<1x8xf32>
    %c0_29 = arith.constant 0 : index
    %c0_30 = arith.constant 0 : index
    %54 = vector.load %arg3[%c0_29, %c0_30] : memref<2x8xf32, #tpu.memory_space<vmem>>, vector<1x8xf32>
    %cst_31 = arith.constant 9.99999974E-6 : f32
    %55 = vector.broadcast %cst_31 : f32 to vector<1x8xf32>
    %56 = arith.addf %53, %55 : vector<1x8xf32>
    %57 = math.rsqrt %56 : vector<1x8xf32>
    %58 = arith.mulf %54, %57 : vector<1x8xf32>
    %c1_32 = arith.constant 1 : index
    %c0_33 = arith.constant 0 : index
    %59 = vector.load %arg3[%c1_32, %c0_33] : memref<2x8xf32, #tpu.memory_space<vmem>>, vector<1x8xf32>
    %60 = arith.mulf %50, %58 : vector<1x8xf32>
    %61 = arith.subf %59, %60 : vector<1x8xf32>
    %62 = tpu.concatenate %58, %61 in 0 : vector<1x8xf32>, vector<1x8xf32> -> vector<2x8xf32>
    %c0_34 = arith.constant 0 : index
    %c0_35 = arith.constant 0 : index
    %63 = vector.load %arg5[%c0_34, %c0_35] : memref<8x136xf32, #tpu.memory_space<vmem>>, vector<8x136xf32>
    %cst_36 = arith.constant dense<0.000000e+00> : vector<2x136xf32>
    %64 = tpu.matmul %62, %63, %cst_36 {dimension_numbers = #tpu.dot_dimension_numbers<[1], [0], [0], [1], [0, 0, 1, 1], [], []>} : vector<2x8xf32>, vector<8x136xf32>, vector<2x136xf32> -> vector<2x136xf32>
    %65 = vector.extract_strided_slice %64 {offsets = [0, 0], sizes = [1, 136], strides = [1, 1]} : vector<2x136xf32> to vector<1x136xf32>
    %66 = vector.broadcast %65 : vector<1x136xf32> to vector<37x136xf32>
    %67 = arith.mulf %23, %66 : vector<37x136xf32>
    %68 = vector.extract_strided_slice %64 {offsets = [1, 0], sizes = [1, 136], strides = [1, 1]} : vector<2x136xf32> to vector<1x136xf32>
    %69 = vector.broadcast %68 : vector<1x136xf32> to vector<37x136xf32>
    %70 = arith.addf %67, %69 : vector<37x136xf32>
    %cst_37 = arith.constant 0.000000e+00 : f32
    %71 = vector.broadcast %cst_37 : f32 to vector<37x136xf32>
    %72 = arith.maximumf %70, %71 : vector<37x136xf32>
    %cst_38 = arith.constant 0.000000e+00 : f32
    %73 = vector.broadcast %cst_38 : f32 to vector<2x136xf32>
    %c0_39 = arith.constant 0 : index
    %c0_40 = arith.constant 0 : index
    %74 = vector.load %arg12[%c0_39, %c0_40] : memref<42x136xf32, #tpu.memory_space<vmem>>, vector<2x136xf32>
    tpu.vector_store %arg12[%c0_39, %c0_40], %73 {strides = array<i32>} : memref<42x136xf32, #tpu.memory_space<vmem>>, vector<2x136xf32>,
    %75 = vector.extract_strided_slice %72 {offsets = [0, 0], sizes = [17, 136], strides = [1, 1]} : vector<37x136xf32> to vector<17x136xf32>
    %c2_41 = arith.constant 2 : index
    %c0_42 = arith.constant 0 : index
    %76 = vector.load %arg12[%c2_41, %c0_42] : memref<42x136xf32, #tpu.memory_space<vmem>>, vector<17x136xf32>
    tpu.vector_store %arg12[%c2_41, %c0_42], %75 {strides = array<i32>} : memref<42x136xf32, #tpu.memory_space<vmem>>, vector<17x136xf32>,
    %c19 = arith.constant 19 : index
    %c0_43 = arith.constant 0 : index
    %77 = vector.load %arg12[%c19, %c0_43] : memref<42x136xf32, #tpu.memory_space<vmem>>, vector<2x136xf32>
    tpu.vector_store %arg12[%c19, %c0_43], %73 {strides = array<i32>} : memref<42x136xf32, #tpu.memory_space<vmem>>, vector<2x136xf32>,
    %c21 = arith.constant 21 : index
    %c0_44 = arith.constant 0 : index
    %78 = vector.load %arg12[%c21, %c0_44] : memref<42x136xf32, #tpu.memory_space<vmem>>, vector<2x136xf32>
    tpu.vector_store %arg12[%c21, %c0_44], %73 {strides = array<i32>} : memref<42x136xf32, #tpu.memory_space<vmem>>, vector<2x136xf32>,
    %79 = vector.extract_strided_slice %72 {offsets = [20, 0], sizes = [17, 136], strides = [1, 1]} : vector<37x136xf32> to vector<17x136xf32>
    %c23 = arith.constant 23 : index
    %c0_45 = arith.constant 0 : index
    %80 = vector.load %arg12[%c23, %c0_45] : memref<42x136xf32, #tpu.memory_space<vmem>>, vector<17x136xf32>
    tpu.vector_store %arg12[%c23, %c0_45], %79 {strides = array<i32>} : memref<42x136xf32, #tpu.memory_space<vmem>>, vector<17x136xf32>,
    %c40 = arith.constant 40 : index
    %c0_46 = arith.constant 0 : index
    %81 = vector.load %arg12[%c40, %c0_46] : memref<42x136xf32, #tpu.memory_space<vmem>>, vector<2x136xf32>
    tpu.vector_store %arg12[%c40, %c0_46], %73 {strides = array<i32>} : memref<42x136xf32, #tpu.memory_space<vmem>>, vector<2x136xf32>,
    %c0_i32_47 = arith.constant 0 : i32
    %82 = tpu.memref_slice %arg14[%c0_i32_47] : memref<1x!tpu.dma_semaphore, #tpu.memory_space<semaphore_mem>> -> memref<1x!tpu.dma_semaphore, #tpu.memory_space<semaphore_mem>>
    %83 = tpu.memref_squeeze %82 : memref<1x!tpu.dma_semaphore, #tpu.memory_space<semaphore_mem>> -> memref<!tpu.dma_semaphore, #tpu.memory_space<semaphore_mem>>
    tpu.wait_dma2 semaphore(%83 : memref<!tpu.dma_semaphore, #tpu.memory_space<semaphore_mem>>) src(%arg6 : memref<4x136x72xf32, #tpu.memory_space<any>>) dst(%arg13 : memref<4x136x72xf32, #tpu.memory_space<vmem>>)
    %c0_48 = arith.constant 0 : index
    %c0_49 = arith.constant 0 : index
    %84 = vector.load %arg12[%c0_48, %c0_49] : memref<42x136xf32, #tpu.memory_space<vmem>>, vector<39x136xf32>
    %c0_50 = arith.constant 0 : index
    %c0_51 = arith.constant 0 : index
    %c0_52 = arith.constant 0 : index
    %85 = vector.load %arg13[%c0_50, %c0_51, %c0_52] : memref<4x136x72xf32, #tpu.memory_space<vmem>>, vector<1x136x72xf32>
    %86 = vector.shape_cast %85 : vector<1x136x72xf32> to vector<136x72xf32>
    %cst_53 = arith.constant dense<0.000000e+00> : vector<39x72xf32>
    %87 = tpu.matmul %84, %86, %cst_53 {dimension_numbers = #tpu.dot_dimension_numbers<[1], [0], [0], [1], [0, 0, 1, 1], [], []>} : vector<39x136xf32>, vector<136x72xf32>, vector<39x72xf32> -> vector<39x72xf32>
    %c1_54 = arith.constant 1 : index
    %c0_55 = arith.constant 0 : index
    %88 = vector.load %arg12[%c1_54, %c0_55] : memref<42x136xf32, #tpu.memory_space<vmem>>, vector<39x136xf32>
    %c1_56 = arith.constant 1 : index
    %c0_57 = arith.constant 0 : index
    %c0_58 = arith.constant 0 : index
    %89 = vector.load %arg13[%c1_56, %c0_57, %c0_58] : memref<4x136x72xf32, #tpu.memory_space<vmem>>, vector<1x136x72xf32>
    %90 = vector.shape_cast %89 : vector<1x136x72xf32> to vector<136x72xf32>
    %cst_59 = arith.constant dense<0.000000e+00> : vector<39x72xf32>
    %91 = tpu.matmul %88, %90, %cst_59 {dimension_numbers = #tpu.dot_dimension_numbers<[1], [0], [0], [1], [0, 0, 1, 1], [], []>} : vector<39x136xf32>, vector<136x72xf32>, vector<39x72xf32> -> vector<39x72xf32>
    %92 = arith.addf %87, %91 : vector<39x72xf32>
    %c2_60 = arith.constant 2 : index
    %c0_61 = arith.constant 0 : index
    %93 = vector.load %arg12[%c2_60, %c0_61] : memref<42x136xf32, #tpu.memory_space<vmem>>, vector<39x136xf32>
    %c2_62 = arith.constant 2 : index
    %c0_63 = arith.constant 0 : index
    %c0_64 = arith.constant 0 : index
    %94 = vector.load %arg13[%c2_62, %c0_63, %c0_64] : memref<4x136x72xf32, #tpu.memory_space<vmem>>, vector<1x136x72xf32>
    %95 = vector.shape_cast %94 : vector<1x136x72xf32> to vector<136x72xf32>
    %cst_65 = arith.constant dense<0.000000e+00> : vector<39x72xf32>
    %96 = tpu.matmul %93, %95, %cst_65 {dimension_numbers = #tpu.dot_dimension_numbers<[1], [0], [0], [1], [0, 0, 1, 1], [], []>} : vector<39x136xf32>, vector<136x72xf32>, vector<39x72xf32> -> vector<39x72xf32>
    %97 = arith.addf %92, %96 : vector<39x72xf32>
    %c3_66 = arith.constant 3 : index
    %c0_67 = arith.constant 0 : index
    %98 = vector.load %arg12[%c3_66, %c0_67] : memref<42x136xf32, #tpu.memory_space<vmem>>, vector<39x136xf32>
    %c3_68 = arith.constant 3 : index
    %c0_69 = arith.constant 0 : index
    %c0_70 = arith.constant 0 : index
    %99 = vector.load %arg13[%c3_68, %c0_69, %c0_70] : memref<4x136x72xf32, #tpu.memory_space<vmem>>, vector<1x136x72xf32>
    %100 = vector.shape_cast %99 : vector<1x136x72xf32> to vector<136x72xf32>
    %cst_71 = arith.constant dense<0.000000e+00> : vector<39x72xf32>
    %101 = tpu.matmul %98, %100, %cst_71 {dimension_numbers = #tpu.dot_dimension_numbers<[1], [0], [0], [1], [0, 0, 1, 1], [], []>} : vector<39x136xf32>, vector<136x72xf32>, vector<39x72xf32> -> vector<39x72xf32>
    %102 = arith.addf %97, %101 : vector<39x72xf32>
    %c0_72 = arith.constant 0 : index
    %c0_73 = arith.constant 0 : index
    %103 = vector.load %arg7[%c0_72, %c0_73] : memref<1x72xf32, #tpu.memory_space<vmem>>, vector<1x72xf32>
    %104 = vector.broadcast %103 : vector<1x72xf32> to vector<39x72xf32>
    %105 = arith.addf %102, %104 : vector<39x72xf32>
    %106 = tpu.iota {dimensions = array<i32: 0>} : vector<39x1xi32>
    %c0_i32_74 = arith.constant 0 : i32
    %107 = vector.broadcast %c0_i32_74 : i32 to vector<39x1xi32>
    %108 = arith.cmpi sge, %106, %107 : vector<39x1xi32>
    %c18_i32 = arith.constant 18 : i32
    %109 = vector.broadcast %c18_i32 : i32 to vector<39x1xi32>
    %110 = arith.cmpi slt, %106, %109 : vector<39x1xi32>
    %111 = arith.andi %108, %110 : vector<39x1xi1>
    %c21_i32 = arith.constant 21 : i32
    %112 = vector.broadcast %c21_i32 : i32 to vector<39x1xi32>
    %113 = arith.cmpi sge, %106, %112 : vector<39x1xi32>
    %c39_i32 = arith.constant 39 : i32
    %114 = vector.broadcast %c39_i32 : i32 to vector<39x1xi32>
    %115 = arith.cmpi slt, %106, %114 : vector<39x1xi32>
    %116 = arith.andi %113, %115 : vector<39x1xi1>
    %117 = arith.ori %111, %116 : vector<39x1xi1>
    %cst_75 = arith.constant 0.000000e+00 : f32
    %118 = vector.shape_cast %117 : vector<39x1xi1> to vector<39x1xi1>
    %119 = vector.broadcast %118 : vector<39x1xi1> to vector<39x72xi1>
    %120 = vector.broadcast %cst_75 : f32 to vector<39x72xf32>
    %121 = arith.select %119, %105, %120 : vector<39x72xi1>, vector<39x72xf32>
    %cst_76 = arith.constant dense<0.000000e+00> : vector<72xf32>
    %122 = vector.multi_reduction <add>, %121, %cst_76 [0] : vector<39x72xf32> to vector<72xf32>
    %123 = vector.shape_cast %122 : vector<72xf32> to vector<1x72xf32>
    %124 = arith.mulf %121, %121 : vector<39x72xf32>
    %cst_77 = arith.constant dense<0.000000e+00> : vector<72xf32>
    %125 = vector.multi_reduction <add>, %124, %cst_77 [0] : vector<39x72xf32> to vector<72xf32>
    %126 = vector.shape_cast %125 : vector<72xf32> to vector<1x72xf32>
    %127 = tpu.concatenate %123, %126 in 0 : vector<1x72xf32>, vector<1x72xf32> -> vector<2x72xf32>
    %c0_78 = arith.constant 0 : index
    %c0_79 = arith.constant 0 : index
    %128 = vector.load %arg9[%c0_78, %c0_79] : memref<72x4xf32, #tpu.memory_space<vmem>>, vector<72x4xf32>
    %cst_80 = arith.constant dense<0.000000e+00> : vector<2x4xf32>
    %129 = tpu.matmul %127, %128, %cst_80 {dimension_numbers = #tpu.dot_dimension_numbers<[1], [0], [0], [1], [0, 0, 1, 1], [], []>} : vector<2x72xf32>, vector<72x4xf32>, vector<2x4xf32> -> vector<2x4xf32>
    %cst_81 = arith.constant 0.00154320989 : f32
    %130 = vector.broadcast %cst_81 : f32 to vector<2x4xf32>
    %131 = arith.mulf %129, %130 : vector<2x4xf32>
    %132 = vector.extract_strided_slice %131 {offsets = [0, 0], sizes = [1, 4], strides = [1, 1]} : vector<2x4xf32> to vector<1x4xf32>
    %133 = vector.extract_strided_slice %131 {offsets = [1, 0], sizes = [1, 4], strides = [1, 1]} : vector<2x4xf32> to vector<1x4xf32>
    %134 = arith.mulf %132, %132 : vector<1x4xf32>
    %135 = arith.subf %133, %134 : vector<1x4xf32>
    %c0_82 = arith.constant 0 : index
    %c0_83 = arith.constant 0 : index
    %136 = vector.load %arg8[%c0_82, %c0_83] : memref<2x4xf32, #tpu.memory_space<vmem>>, vector<1x4xf32>
    %cst_84 = arith.constant 9.99999974E-6 : f32
    %137 = vector.broadcast %cst_84 : f32 to vector<1x4xf32>
    %138 = arith.addf %135, %137 : vector<1x4xf32>
    %139 = math.rsqrt %138 : vector<1x4xf32>
    %140 = arith.mulf %136, %139 : vector<1x4xf32>
    %c1_85 = arith.constant 1 : index
    %c0_86 = arith.constant 0 : index
    %141 = vector.load %arg8[%c1_85, %c0_86] : memref<2x4xf32, #tpu.memory_space<vmem>>, vector<1x4xf32>
    %142 = arith.mulf %132, %140 : vector<1x4xf32>
    %143 = arith.subf %141, %142 : vector<1x4xf32>
    %144 = tpu.concatenate %140, %143 in 0 : vector<1x4xf32>, vector<1x4xf32> -> vector<2x4xf32>
    %c0_87 = arith.constant 0 : index
    %c0_88 = arith.constant 0 : index
    %145 = vector.load %arg10[%c0_87, %c0_88] : memref<4x72xf32, #tpu.memory_space<vmem>>, vector<4x72xf32>
    %cst_89 = arith.constant dense<0.000000e+00> : vector<2x72xf32>
    %146 = tpu.matmul %144, %145, %cst_89 {dimension_numbers = #tpu.dot_dimension_numbers<[1], [0], [0], [1], [0, 0, 1, 1], [], []>} : vector<2x4xf32>, vector<4x72xf32>, vector<2x72xf32> -> vector<2x72xf32>
    %147 = vector.extract_strided_slice %146 {offsets = [0, 0], sizes = [1, 72], strides = [1, 1]} : vector<2x72xf32> to vector<1x72xf32>
    %148 = vector.broadcast %147 : vector<1x72xf32> to vector<39x72xf32>
    %149 = arith.mulf %105, %148 : vector<39x72xf32>
    %150 = vector.extract_strided_slice %146 {offsets = [1, 0], sizes = [1, 72], strides = [1, 1]} : vector<2x72xf32> to vector<1x72xf32>
    %151 = vector.broadcast %150 : vector<1x72xf32> to vector<39x72xf32>
    %152 = arith.addf %149, %151 : vector<39x72xf32>
    %cst_90 = arith.constant 0.000000e+00 : f32
    %153 = vector.broadcast %cst_90 : f32 to vector<39x72xf32>
    %154 = arith.maximumf %152, %153 : vector<39x72xf32>
    %155 = vector.extract_strided_slice %154 {offsets = [0, 0], sizes = [18, 72], strides = [1, 1]} : vector<39x72xf32> to vector<18x72xf32>
    %c0_91 = arith.constant 0 : index
    %c0_92 = arith.constant 0 : index
    %156 = vector.load %arg11[%c0_91, %c0_92] : memref<36x72xf32, #tpu.memory_space<vmem>>, vector<18x72xf32>
    tpu.vector_store %arg11[%c0_91, %c0_92], %155 {strides = array<i32>} : memref<36x72xf32, #tpu.memory_space<vmem>>, vector<18x72xf32>,
    %157 = vector.extract_strided_slice %154 {offsets = [21, 0], sizes = [18, 72], strides = [1, 1]} : vector<39x72xf32> to vector<18x72xf32>
    %c18 = arith.constant 18 : index
    %c0_93 = arith.constant 0 : index
    %158 = vector.load %arg11[%c18, %c0_93] : memref<36x72xf32, #tpu.memory_space<vmem>>, vector<18x72xf32>
    tpu.vector_store %arg11[%c18, %c0_93], %157 {strides = array<i32>} : memref<36x72xf32, #tpu.memory_space<vmem>>, vector<18x72xf32>,
    return
  }
}

</mosaic_0001>

<bundles_post_ra>
// kernel: deconv_block_forward.1
= control target key start
LH: loop header
LB: loop body
LE: loop exit
PB: predicated region body
PF: predicated region fallthrough
CT: control target
= control target key end

     0   :  { %16 = vsyncpa [#allocation6], 0  ;;  %s1863_s20 = smov [#allocation5]   ;;  %s1864_s22 = smov 256   ;;  %s2863_s0 = inlined_call_operand.vmem [shape: f32[40,64], index: 0, kind: input, shape index: {}]   ;;  %s2864_s1 = inlined_call_operand.hbm [shape: f32[4,64,136], index: 1, kind: input, shape index: {}]   ;;  %s2865_s2 = inlined_call_operand.vmem [shape: f32[1,136], index: 2, kind: input, shape index: {}]   ;;  %s2866_s3 = inlined_call_operand.vmem [shape: f32[2,8], index: 3, kind: input, shape index: {}]   ;;  %s2867_s4 = inlined_call_operand.vmem [shape: f32[136,8], index: 4, kind: input, shape index: {}]   ;;  %s2868_s5 = inlined_call_operand.vmem [shape: f32[8,136], index: 5, kind: input, shape index: {}]   ;;  %s2869_s6 = inlined_call_operand.vmem [shape: f32[4,136,72], index: 6, kind: input, shape index: {}]   ;;  %s2870_s7 = inlined_call_operand.vmem [shape: f32[1,72], index: 7, kind: input, shape index: {}]   ;;  %s2871_s8 = inlined_call_operand.vmem [shape: f32[2,4], index: 8, kind: input, shape index: {}]   ;;  %s2872_s9 = inlined_call_operand.vmem [shape: f32[72,4], index: 9, kind: input, shape index: {}]   ;;  %s2873_s10 = inlined_call_operand.vmem [shape: f32[4,72], index: 10, kind: input, shape index: {}]   ;;  %s2874_s11 = inlined_call_operand.vmem [shape: f32[36,72], index: 11, kind: output, shape index: {}]  }
   0x1   :  { %s23_s19 = sshll.u32 %s2864_s1, 4  ;;  %s25_s21 = sshll.u32 %s1863_s20, 4  ;;  %s24_s19 = int_to_ptr.hbm [resolvable:$true] %s23_s19  ;;  %s26_s21 = int_to_ptr.vmem [resolvable:$true] %s25_s21 }
   0x2   :  { %s1865_s23 = smov 16  }
   0x3   :  { %31 = dma.hbm_to_vmem [thread:$0]  %s24_s19, 8192, %s26_s21, [#allocation6], %s1864_s22, %s1864_s22, %s1865_s23  }
   0x4   :  { %1859 = dma.done.wait [#allocation6], 8192  }
   0x5   :  { %1860 = vsyncadd [#allocation6], 4294959104  ;;  %v1933_v0 = vld [vmem:[%s2869_s6] sm:$0xff]  ;;  %v1938_v1 = vld [vmem:[%s2869_s6 + $0x8] sm:$0xff] }
   0x6   :  { %2875 = vst [vmem:[#allocation10_spill] sm:$0xff] %v1933_v0  ;;  %v1943_v2 = vld [vmem:[%s2869_s6 + $0x10] sm:$0xff]  ;;  %v1948_v3 = vld [vmem:[%s2869_s6 + $0x18] sm:$0xff]  ;;  %v1953_v4 = vld [vmem:[%s2869_s6 + $0x20] sm:$0xff] }
   0x7   :  { %2876 = vst [vmem:[#allocation11_spill] sm:$0xff] %v1938_v1  ;;  %v1958_v5 = vld [vmem:[%s2869_s6 + $0x28] sm:$0xff]  ;;  %v1963_v6 = vld [vmem:[%s2869_s6 + $0x30] sm:$0xff]  ;;  %v1968_v7 = vld [vmem:[%s2869_s6 + $0x38] sm:$0xff] }
   0x8   :  { %2877 = vst [vmem:[#allocation12_spill] sm:$0xff] %v1943_v2  ;;  %v1973_v8 = vld [vmem:[%s2869_s6 + $0x40] sm:$0xff]  ;;  %v1978_v9 = vld [vmem:[%s2869_s6 + $0x48] sm:$0xff]  ;;  %v1983_v10 = vld [vmem:[%s2869_s6 + $0x50] sm:$0xff] }
   0x9   :  { %2878 = vst [vmem:[#allocation13_spill] sm:$0xff] %v1948_v3  ;;  %v1988_v11 = vld [vmem:[%s2869_s6 + $0x58] sm:$0xff]  ;;  %v1993_v12 = vld [vmem:[%s2869_s6 + $0x60] sm:$0xff]  ;;  %v1998_v13 = vld [vmem:[%s2869_s6 + $0x68] sm:$0xff] }
   0xa   :  { %2879 = vst [vmem:[#allocation14_spill] sm:$0xff] %v1953_v4  ;;  %v2003_v14 = vld [vmem:[%s2869_s6 + $0x70] sm:$0xff]  ;;  %v2008_v15 = vld [vmem:[%s2869_s6 + $0x78] sm:$0xff]  ;;  %v2013_v16 = vld [vmem:[%s2869_s6 + $0x80] sm:$0xff] }
   0xb   :  { %2880 = vst [vmem:[#allocation15_spill] sm:$0xff] %v1958_v5  ;;  %v2018_v17 = vld [vmem:[%s2869_s6 + $0x88] sm:$0xff]  ;;  %v2023_v18 = vld [vmem:[%s2869_s6 + $0x90] sm:$0xff]  ;;  %v2028_v19 = vld [vmem:[%s2869_s6 + $0x98] sm:$0xff] }
   0xc   :  { %2881 = vst [vmem:[#allocation16_spill] sm:$0xff] %v1963_v6  ;;  %v2033_v20 = vld [vmem:[%s2869_s6 + $0xa0] sm:$0xff]  ;;  %v2038_v21 = vld [vmem:[%s2869_s6 + $0xa8] sm:$0xff]  ;;  %v2043_v22 = vld [vmem:[%s2869_s6 + $0xb0] sm:$0xff] }
   0xd   :  { %2882 = vst [vmem:[#allocation17_spill] sm:$0xff] %v1968_v7  ;;  %v2048_v23 = vld [vmem:[%s2869_s6 + $0xb8] sm:$0xff]  ;;  %v2053_v24 = vld [vmem:[%s2869_s6 + $0xc0] sm:$0xff]  ;;  %v2058_v25 = vld [vmem:[%s2869_s6 + $0xc8] sm:$0xff] }
   0xe   :  { %2883 = vst [vmem:[#allocation18_spill] sm:$0xff] %v1973_v8  ;;  %v2063_v26 = vld [vmem:[%s2869_s6 + $0xd0] sm:$0xff]  ;;  %v2068_v27 = vld [vmem:[%s2869_s6 + $0xd8] sm:$0xff]  ;;  %v2073_v28 = vld [vmem:[%s2869_s6 + $0xe0] sm:$0xff] }
   0xf   :  { %2884 = vst [vmem:[#allocation19_spill] sm:$0xff] %v2018_v17  ;;  %v2078_v29 = vld [vmem:[%s2869_s6 + $0xe8] sm:$0xff]  ;;  %v2083_v30 = vld [vmem:[%s2869_s6 + $0xf0] sm:$0xff]  ;;  %v2088_v31 = vld [vmem:[%s2869_s6 + $0xf8] sm:$0xff] }
  0x10   :  { %2885 = vst [vmem:[#allocation20_spill] sm:$0xff] %v2023_v18  ;;  %v2093_v32 = vld [vmem:[%s2869_s6 + $0x100] sm:$0xff]  ;;  %v2098_v33 = vld [vmem:[%s2869_s6 + $0x108] sm:$0xff]  ;;  %v2103_v34 = vld [vmem:[%s2869_s6 + $0x110] sm:$0xff] }
  0x11   :  { %2886 = vst [vmem:[#allocation21_spill] sm:$0xff] %v2028_v19  ;;  %v2108_v35 = vld [vmem:[%s2869_s6 + $0x118] sm:$0xff]  ;;  %v2113_v36 = vld [vmem:[%s2869_s6 + $0x120] sm:$0xff]  ;;  %v2118_v37 = vld [vmem:[%s2869_s6 + $0x128] sm:$0xff] }
  0x12   :  { %2887 = vst [vmem:[#allocation22_spill] sm:$0xff] %v2033_v20  ;;  %v2123_v38 = vld [vmem:[%s2869_s6 + $0x130] sm:$0xff]  ;;  %v2128_v39 = vld [vmem:[%s2869_s6 + $0x138] sm:$0xff]  ;;  %v2133_v40 = vld [vmem:[%s2869_s6 + $0x140] sm:$0xff] }
  0x13   :  { %2888 = vst [vmem:[#allocation23_spill] sm:$0xff] %v2038_v21  ;;  %v2138_v41 = vld [vmem:[%s2869_s6 + $0x148] sm:$0xff]  ;;  %v2143_v42 = vld [vmem:[%s2869_s6 + $0x150] sm:$0xff]  ;;  %v2148_v43 = vld [vmem:[%s2869_s6 + $0x158] sm:$0xff] }
  0x14   :  { %2889 = vst [vmem:[#allocation24_spill] sm:$0xff] %v2043_v22  ;;  %v2153_v44 = vld [vmem:[%s2869_s6 + $0x160] sm:$0xff]  ;;  %v2158_v45 = vld [vmem:[%s2869_s6 + $0x168] sm:$0xff]  ;;  %v2163_v46 = vld [vmem:[%s2869_s6 + $0x170] sm:$0xff] }
  0x15   :  { %2890 = vst [vmem:[#allocation25_spill] sm:$0xff] %v2048_v23  ;;  %v2168_v47 = vld [vmem:[%s2869_s6 + $0x178] sm:$0xff]  ;;  %v2173_v48 = vld [vmem:[%s2869_s6 + $0x180] sm:$0xff]  ;;  %v2178_v49 = vld [vmem:[%s2869_s6 + $0x188] sm:$0xff] }
  0x16   :  { %2891 = vst [vmem:[#allocation26_spill] sm:$0xff] %v2053_v24  ;;  %v2183_v50 = vld [vmem:[%s2869_s6 + $0x190] sm:$0xff]  ;;  %v2188_v51 = vld [vmem:[%s2869_s6 + $0x198] sm:$0xff]  ;;  %v2193_v52 = vld [vmem:[%s2869_s6 + $0x1a0] sm:$0xff] }
  0x17   :  { %2892 = vst [vmem:[#allocation27_spill] sm:$0xff] %v2058_v25  ;;  %v2198_v53 = vld [vmem:[%s2869_s6 + $0x1a8] sm:$0xff]  ;;  %v2203_v54 = vld [vmem:[%s2869_s6 + $0x1b0] sm:$0xff]  ;;  %v2208_v55 = vld [vmem:[%s2869_s6 + $0x1b8] sm:$0xff] }
  0x18   :  { %2893 = vst [vmem:[#allocation28_spill] sm:$0xff] %v2063_v26  ;;  %v2213_v56 = vld [vmem:[%s2869_s6 + $0x1c0] sm:$0xff]  ;;  %v2218_v57 = vld [vmem:[%s2869_s6 + $0x1c8] sm:$0xff]  ;;  %v2223_v58 = vld [vmem:[%s2869_s6 + $0x1d0] sm:$0xff] }
  0x19   :  { %2894 = vst [vmem:[#allocation29_spill] sm:$0xff] %v2103_v34  ;;  %v2228_v59 = vld [vmem:[%s2869_s6 + $0x1d8] sm:$0xff]  ;;  %v2233_v60 = vld [vmem:[%s2869_s6 + $0x1e0] sm:$0xff]  ;;  %v2238_v61 = vld [vmem:[%s2869_s6 + $0x1e8] sm:$0xff] }
  0x1a   :  { %2895 = vst [vmem:[#allocation30_spill] sm:$0xff] %v2108_v35  ;;  %v2243_v62 = vld [vmem:[%s2869_s6 + $0x1f0] sm:$0xff]  ;;  %v2248_v63 = vld [vmem:[%s2869_s6 + $0x1f8] sm:$0xff] }
  0x1b   :  { %2896 = vst [vmem:[#allocation31_spill] sm:$0xff] %v2113_v36 }
  0x1c   :  { %2897 = vst [vmem:[#allocation32_spill] sm:$0xff] %v2118_v37 }
  0x1d   :  { %2898 = vst [vmem:[#allocation33_spill] sm:$0xff] %v2123_v38 }
  0x1e   :  { %2899 = vst [vmem:[#allocation34_spill] sm:$0xff] %v2128_v39 }
  0x1f   :  { %2900 = vst [vmem:[#allocation35_spill] sm:$0xff] %v2133_v40 }
  0x20   :  { %2901 = vst [vmem:[#allocation36_spill] sm:$0xff] %v2138_v41 }
  0x21   :  { %2902 = vst [vmem:[#allocation37_spill] sm:$0xff] %v2143_v42 }
  0x22   :  { %2903 = vst [vmem:[#allocation38_spill] sm:$0xff] %v2148_v43 }
  0x23   :  { %2904 = vst [vmem:[#allocation39_spill] sm:$0xff] %v2153_v44 }
  0x24   :  { %2905 = vst [vmem:[#allocation40_spill] sm:$0xff] %v2158_v45 }
  0x25   :  { %2906 = vst [vmem:[#allocation41_spill] sm:$0xff] %v2188_v51  ;;  %v2253_v51 = vld [vmem:[%s2869_s6 + $0x200] sm:$0xff] }
  0x26   :  { %2907 = vst [vmem:[#allocation42_spill] sm:$0xff] %v2193_v52  ;;  %v2258_v52 = vld [vmem:[%s2869_s6 + $0x208] sm:$0xff] }
  0x27   :  { %2908 = vst [vmem:[#allocation43_spill] sm:$0xff] %v2198_v53  ;;  %v2263_v53 = vld [vmem:[%s2869_s6 + $0x210] sm:$0xff] }
  0x28   :  { %2909 = vst [vmem:[#allocation44_spill] sm:$0xff] %v2203_v54  ;;  %v2268_v54 = vld [vmem:[%s2869_s6 + $0x218] sm:$0xff] }
  0x29   :  { %2910 = vst [vmem:[#allocation45_spill] sm:$0xff] %v2208_v55 }
  0x2a   :  { %2911 = vst [vmem:[#allocation46_spill] sm:$0xff] %v2213_v56 }
  0x2b   :  { %2912 = vst [vmem:[#allocation47_spill] sm:$0xff] %v2218_v57 }
  0x2c   :  { %2913 = vst [vmem:[#allocation48_spill] sm:$0xff] %v2223_v58 }
  0x2d   :  { %2914 = vst [vmem:[#allocation49_spill] sm:$0xff] %v2228_v59 }
  0x2e   :  { %2915 = vst [vmem:[#allocation50_spill] sm:$0xff] %v2233_v60 }
  0x2f   :  { %2916 = vst [vmem:[#allocation51_spill] sm:$0xff] %v2238_v61 }
  0x30   :  { %2917 = vst [vmem:[#allocation52_spill] sm:$0xff] %v2243_v62 }
  0x31   :  { %2918 = vst [vmem:[#allocation53_spill] sm:$0xff] %v2248_v63 }
  0x32   :  { %2919 = vst [vmem:[#allocation54_spill] sm:$0xff] %v2253_v51 }
  0x33   :  { %2920 = vst [vmem:[#allocation55_spill] sm:$0xff] %v2258_v52 }
  0x34   :  { %2921 = vst [vmem:[#allocation56_spill] sm:$0xff] %v2263_v53 }
  0x35   :  { %2922 = vst [vmem:[#allocation57_spill] sm:$0xff] %v2268_v54 }
  0x36   :  { %203 = vsyncadd [#allocation4], 8704  ;;  %v245_v55 = vld [vmem:[#allocation5 + $0xf0] sm:$0xff]  ;;  %v246_v56 = vld [vmem:[#allocation5 + $0xf8] sm:$0xff]  ;;  %vm247_vm0 = vcmask 523264   ;;  %v644_v23 = vlaneseq  ;;  %vm717_vm5 = vcmask 64512  }
  0x37   :  { %271 = vmatpush.msra.mxu0 %v245_v55  ;;  %303 = vmatpush.msra.mxu1 %v246_v56  ;;  %v224_v57 = vld [vmem:[#allocation5 + $0x78] sm:$0xff]  ;;  %v243_v58 = vld [vmem:[#allocation5 + $0xe0] sm:$0xff]  ;;  %v244_v59 = vld [vmem:[#allocation5 + $0xe8] sm:$0xff]  ;;  %vm725_vm6 = vcmask 61440   ;;  %vm708_vm7 = vcmask 1044480   ;;  %vm770_vm8 = vcmask 1040384  }
  0x38   :  { %382 = vmatpush.msra.mxu3 %v224_v57  ;;  %v222_v60 = vld [vmem:[#allocation5 + $0x68] sm:$0xff]  ;;  %v241_v61 = vld [vmem:[#allocation5 + $0xd0] sm:$0xff]  ;;  %v242_v62 = vld [vmem:[#allocation5 + $0xd8] sm:$0xff]  ;;  %v645_v24 = vshrl.u32 %v644_v23, 7  ;;  %vm942_vm12 = vcmask 58368   ;;  %vm976_vm13 = vcmask 61443  }
  0x39   :  { %272 = vmatpush.msra.mxu0 %v243_v58  ;;  %304 = vmatpush.msra.mxu1 %v244_v59  ;;  %v220_v34 = vld [vmem:[#allocation5 + $0x58] sm:$0xff]  ;;  %v239_v63 = vld [vmem:[#allocation5 + $0xc0] sm:$0xff]  ;;  %v240_v35 = vld [vmem:[#allocation5 + $0xc8] sm:$0xff]  ;;  %vm979_vm14 = vcmask 63493   ;;  %vm950_vm15 = vcmask 1041408  }
  0x3a   :  { %383 = vmatpush.msra.mxu3 %v222_v60  ;;  %v218_v51 = vld [vmem:[#allocation5 + $0x48] sm:$0xff]  ;;  %v237_v36 = vld [vmem:[#allocation5 + $0xb0] sm:$0xff]  ;;  %v238_v55 = vld [vmem:[#allocation5 + $0xb8] sm:$0xff]  ;;  %v2431_v26 = vadd.s32 16, %v645_v24 }
  0x3b   :  { %273 = vmatpush.msra.mxu0 %v241_v61  ;;  %305 = vmatpush.msra.mxu1 %v242_v62  ;;  %v216_v56 = vld [vmem:[#allocation5 + $0x38] sm:$0xff]  ;;  %v235_v57 = vld [vmem:[#allocation5 + $0xa0] sm:$0xff]  ;;  %v236_v52 = vld [vmem:[#allocation5 + $0xa8] sm:$0xff] }
  0x3c   :  { %384 = vmatpush.msra.mxu3 %v220_v34  ;;  %v223_v53 = vld [vmem:[#allocation5 + $0x70] sm:$0xff]  ;;  %v214_v58 = vld [vmem:[#allocation5 + $0x28] sm:$0xff]  ;;  %v221_v59 = vld [vmem:[#allocation5 + $0x60] sm:$0xff]  ;;  %vm657_vm1 = vcmp.lt.s32.totalorder %v2431_v26, 17  ;;  %vm667_vm2 = vcmp.ge.s32.totalorder %v2431_v26, 20 }
  0x3d   :  { %274 = vmatpush.msra.mxu0 %v239_v63  ;;  %306 = vmatpush.msra.mxu1 %v240_v35  ;;  %v233_v60 = vld [vmem:[#allocation5 + $0x90] sm:$0xff]  ;;  %v234_v37 = vld [vmem:[#allocation5 + $0x98] sm:$0xff]  ;;  %v231_v62 = vld [vmem:[#allocation5 + $0x80] sm:$0xff] }
  0x3e   :  { %385 = vmatpush.msra.mxu3 %v218_v51  ;;  %1818 = vmatpush.msra.mxu2 %v223_v53  ;;  %v212_v34 = vld [vmem:[#allocation5 + $0x18] sm:$0xff]  ;;  %v219_v61 = vld [vmem:[#allocation5 + $0x50] sm:$0xff]  ;;  %v232_v35 = vld [vmem:[#allocation5 + $0x88] sm:$0xff] }
  0x3f   :  { %275 = vmatpush.msra.mxu0 %v237_v36  ;;  %307 = vmatpush.msra.mxu1 %v238_v55  ;;  %v210_v51 = vld [vmem:[#allocation5 + $0x8] sm:$0xff]  ;;  %v217_v63 = vld [vmem:[#allocation5 + $0x40] sm:$0xff]  ;;  %v215_v55 = vld [vmem:[#allocation5 + $0x30] sm:$0xff] }
  0x40   :  { %386 = vmatpush.msra.mxu3 %v216_v56  ;;  %1819 = vmatpush.msra.mxu2 %v221_v59  ;;  %v225_v36 = vld [vmem:[%s2863_s0 + $0x1] sm:$0xff]  ;;  %v538_v56 = vld [vmem:[#allocation5 + $0x1f8] sm:$0xff]  ;;  %v787_v3 = vld [vmem:[%s2867_s4 + $0x70] sm:$0xff] }
  0x41   :  { %276 = vmatpush.msra.mxu0 %v235_v57  ;;  %308 = vmatpush.msra.mxu1 %v236_v52  ;;  %v2276_v52 = vld [vmem:[%s2863_s0] sm:$0xff]  ;;  %v425_v57 = vld [vmem:[#allocation5 + $0x168] sm:$0xff]  ;;  %v788_v20 = vld [vmem:[%s2867_s4 + $0x78] sm:$0xff] }
  0x42   :  { %387 = vmatpush.msra.mxu3 %v214_v58  ;;  %1820 = vmatpush.msra.mxu2 %v219_v61  ;;  %v213_v58 = vld [vmem:[#allocation5 + $0x20] sm:$0xff]  ;;  %v524_v54 = vld [vmem:[#allocation5 + $0x188] sm:$0xff]  ;;  %v783_v5 = vld [vmem:[%s2867_s4 + $0x50] sm:$0xff] }
  0x43   :  { %277 = vmatpush.msra.mxu0 %v233_v60  ;;  %309 = vmatpush.msra.mxu1 %v234_v37  ;;  %v427_v37 = vld [vmem:[#allocation5 + $0x178] sm:$0xff]  ;;  %v536_v60 = vld [vmem:[#allocation5 + $0x1e8] sm:$0xff]  ;;  %v785_v22 = vld [vmem:[%s2867_s4 + $0x60] sm:$0xff] }
  0x44   :  { %388 = vmatpush.msra.mxu3 %v212_v34  ;;  %1821 = vmatpush.msra.mxu2 %v217_v63  ;;  %v423_v34 = vld [vmem:[#allocation5 + $0x158] sm:$0xff]  ;;  %v786_v21 = vld [vmem:[%s2867_s4 + $0x68] sm:$0xff]  ;;  %v628_v23 = vld [vmem:[%s2865_s2] sm:$0x3] }
  0x45   :  { %278 = vmatpush.msra.mxu0 %v231_v62  ;;  %310 = vmatpush.msra.mxu1 %v232_v35  ;;  %v226_v62 = vld [vmem:[%s2863_s0 + $0x9] sm:$0xff]  ;;  %vm2462_vm3 = vmor %vm657_vm1, %vm667_vm2  ;;  %vm968_vm1 = vcmask 64514   ;;  %vm973_vm2 = vcmask 59392  }
  0x46   :  { %389 = vmatpush.msra.mxu3 %v210_v51  ;;  %1751 = vmatmul.msk.f32.vlgmr.msra.gmra.mxu0 %vm247_vm0, %v225_v36  ;;  %v2288_v35 = vld [vmem:[%s2863_s0 + $0x8] sm:$0xff]  ;;  %v207_v51 = vld [vmem:[%s2863_s0 + $0x18] sm:$0xff] }
  0x47   :  { %1756 = vmatmul.msk.f32.vlgmr.msra.gmra.mxu1 %vm247_vm0, %v225_v36  ;;  %350 = vmatpush.msrb.mxu0 %v223_v53  ;;  %v211_v53 = vld [vmem:[#allocation5 + $0x10] sm:$0xff]  ;;  %v421_v36 = vld [vmem:[#allocation5 + $0x148] sm:$0xff] }
  0x48   :  { %1766 = vmatmul.msk.f32.vlgmr.msra.gmra.mxu3 %vm247_vm0, %v2276_v52  ;;  %483 = vmatpush.msrb.mxu1 %v427_v37  ;;  %v537_v37 = vld [vmem:[#allocation5 + $0x1f0] sm:$0xff] }
  0x49   :  { %351 = vmatpush.msrb.mxu0 %v221_v59  ;;  %1822 = vmatpush.msra.mxu2 %v215_v55  ;;  %v209_v59 = vld [vmem:[#allocation5] sm:$0xff] }
  0x4a   :  { %594 = vmatpush.msrb.mxu3 %v538_v56  ;;  %484 = vmatpush.msrb.mxu1 %v425_v57  ;;  %v419_v56 = vld [vmem:[#allocation5 + $0x138] sm:$0xff]  ;;  %v535_v57 = vld [vmem:[#allocation5 + $0x1e0] sm:$0xff] }
  0x4b   :  { %352 = vmatpush.msrb.mxu0 %v219_v61  ;;  %1823 = vmatpush.msra.mxu2 %v213_v58  ;;  %v534_v61 = vld [vmem:[#allocation5 + $0x1d8] sm:$0xff] }
  0x4c   :  { %595 = vmatpush.msrb.mxu3 %v536_v60  ;;  %485 = vmatpush.msrb.mxu1 %v423_v34  ;;  %v227_v60 = vld [vmem:[%s2863_s0 + $0x11] sm:$0xff] }
  0x4d   :  { %353 = vmatpush.msrb.mxu0 %v217_v63  ;;  %1824 = vmatpush.msra.mxu2 %v211_v53  ;;  %v532_v63 = vld [vmem:[#allocation5 + $0x1c8] sm:$0xff]  ;;  %v426_v34 = vld [vmem:[#allocation5 + $0x170] sm:$0xff] }
  0x4e   :  { %1752 = vmatmul.msk.f32.gmra.mxu0 %vm247_vm0, %v226_v62  ;;  %596 = vmatpush.msrb.mxu3 %v534_v61  ;;  %v208_v61 = vld [vmem:[%s2863_s0 + $0x20] sm:$0x1f] }
  0x4f   :  { %1757 = vmatmul.msk.f32.gmra.mxu1 %vm247_vm0, %v226_v62  ;;  %354 = vmatpush.msrb.mxu0 %v215_v55  ;;  %v530_v55 = vld [vmem:[#allocation5 + $0x1b8] sm:$0xff]  ;;  %v2304_v62 = vld [vmem:[%s2863_s0 + $0x10] sm:$0xff] }
  0x50   :  { %1767 = vmatmul.msk.f32.gmra.mxu3 %vm247_vm0, %v2288_v35  ;;  %1825 = vmatpush.msra.mxu2 %v209_v59 }
  0x51   :  { %1764 = vmatmul.msk.f32.vlgmr.msra.gmra.mxu2 %vm247_vm0, %v207_v51  ;;  %355 = vmatpush.msrb.mxu0 %v213_v58  ;;  %v417_v58 = vld [vmem:[#allocation5 + $0x128] sm:$0xff] }
  0x52   :  { %486 = vmatpush.msrb.mxu1 %v421_v36  ;;  %562 = vmatpush.msrb.mxu2 %v537_v37  ;;  %v415_v36 = vld [vmem:[#allocation5 + $0x118] sm:$0xff]  ;;  %v424_v37 = vld [vmem:[#allocation5 + $0x160] sm:$0xff] }
  0x53   :  { %356 = vmatpush.msrb.mxu0 %v211_v53  ;;  %597 = vmatpush.msrb.mxu3 %v532_v63  ;;  %v528_v53 = vld [vmem:[#allocation5 + $0x1a8] sm:$0xff]  ;;  %v533_v63 = vld [vmem:[#allocation5 + $0x1d0] sm:$0xff] }
  0x54   :  { %487 = vmatpush.msrb.mxu1 %v419_v56  ;;  %563 = vmatpush.msrb.mxu2 %v535_v57  ;;  %v413_v56 = vld [vmem:[#allocation5 + $0x108] sm:$0xff]  ;;  %v422_v57 = vld [vmem:[#allocation5 + $0x150] sm:$0xff] }
  0x55   :  { %357 = vmatpush.msrb.mxu0 %v209_v59  ;;  %598 = vmatpush.msrb.mxu3 %v530_v55  ;;  %v526_v59 = vld [vmem:[#allocation5 + $0x198] sm:$0xff]  ;;  %v531_v55 = vld [vmem:[#allocation5 + $0x1c0] sm:$0xff] }
  0x56   :  { %1753 = vmatmul.msk.f32.gmra.mxu0 %vm247_vm0, %v227_v60  ;;  %488 = vmatpush.msrb.mxu1 %v417_v58  ;;  %v529_v58 = vld [vmem:[#allocation5 + $0x1b0] sm:$0xff] }
  0x57   :  { %1758 = vmatmul.msk.f32.gmra.mxu1 %vm247_vm0, %v227_v60  ;;  %451 = vmatpush.msra.mxu0 %v426_v34  ;;  %v228_v60 = vld [vmem:[%s2863_s0 + $0x19] sm:$0xff] }
  0x58   :  { %1768 = vmatmul.msk.f32.gmra.mxu3 %vm247_vm0, %v2304_v62  ;;  %489 = vmatpush.msrb.mxu1 %v415_v36  ;;  %v420_v34 = vld [vmem:[#allocation5 + $0x140] sm:$0xff] }
  0x59   :  { %1765 = vmatmul.msk.f32.gmra.mxu2 %vm247_vm0, %v208_v61  ;;  %599 = vmatpush.msrb.mxu3 %v528_v53  ;;  %v418_v53 = vld [vmem:[#allocation5 + $0x130] sm:$0xff]  ;;  %v527_v36 = vld [vmem:[#allocation5 + $0x1a0] sm:$0xff] }
  0x5a   :  { %452 = vmatpush.msra.mxu0 %v424_v37  ;;  %564 = vmatpush.msrb.mxu2 %v533_v63  ;;  %v416_v37 = vld [vmem:[#allocation5 + $0x120] sm:$0xff]  ;;  %v414_v63 = vld [vmem:[#allocation5 + $0x110] sm:$0xff] }
  0x5b   :  { %600 = vmatpush.msrb.mxu3 %v526_v59  ;;  %490 = vmatpush.msrb.mxu1 %v413_v56  ;;  %v525_v59 = vld [vmem:[#allocation5 + $0x190] sm:$0xff]  ;;  %v523_v56 = vld [vmem:[#allocation5 + $0x180] sm:$0xff] }
  0x5c   :  { %453 = vmatpush.msra.mxu0 %v422_v57  ;;  %565 = vmatpush.msrb.mxu2 %v531_v55  ;;  %v412_v57 = vld [vmem:[#allocation5 + $0x100] sm:$0xff] }
  0x5d   :  { %601 = vmatpush.msrb.mxu3 %v524_v54  ;;  %v229_v54 = vld [vmem:[%s2863_s0 + $0x21] sm:$0x1f]  ;;  %793 = vmatpush.msra.mxu1 %v788_v20  ;;  %v784_v20 = vld [vmem:[%s2867_s4 + $0x58] sm:$0xff] }
  0x5e   :  { %1754 = vmatmul.msk.f32.gmra.mxu0 %vm247_vm0, %v228_v60  ;;  %566 = vmatpush.msrb.mxu2 %v529_v58  ;;  %v406_v55 = vld [vmem:[%s2863_s0 + $0x2] sm:$0xff]  ;;  %v409_v58 = vld [vmem:[%s2863_s0 + $0x1a] sm:$0xff] }
  0x5f   :  { %1759 = vmatmul.msk.f32.gmra.mxu1 %vm247_vm0, %v228_v60  ;;  %454 = vmatpush.msra.mxu0 %v420_v34  ;;  %v518_v60 = vld [vmem:[%s2863_s0 + $0xb] sm:$0xff] }
  0x60   :  { %1769 = vmatmul.msk.f32.gmra.mxu3 %vm247_vm0, %v207_v51  ;;  %567 = vmatpush.msrb.mxu2 %v527_v36  ;;  %v517_v51 = vld [vmem:[%s2863_s0 + $0x3] sm:$0xff]  ;;  %v408_v34 = vld [vmem:[%s2863_s0 + $0x12] sm:$0xff] }
  0x61   :  { %455 = vmatpush.msra.mxu0 %v418_v53  ;;  %v410_v53 = vld [vmem:[%s2863_s0 + $0x22] sm:$0x1f]  ;;  %794 = vmatpush.msra.mxu1 %v787_v3 }
  0x62   :  { %568 = vmatpush.msrb.mxu2 %v525_v59 }
  0x63   :  { %456 = vmatpush.msra.mxu0 %v416_v37  ;;  %795 = vmatpush.msra.mxu1 %v786_v21  ;;  %v782_v21 = vld [vmem:[%s2867_s4 + $0x48] sm:$0xff] }
  0x64   :  { %569 = vmatpush.msrb.mxu2 %v523_v56 }
  0x65   :  { %457 = vmatpush.msra.mxu0 %v414_v63  ;;  %1781 = vmatmul.msk.f32.vlgmr.msrb.gmra.mxu2 %vm247_vm0, %v517_v51 }
  0x66   :  { %1755 = vmatmul.msk.f32.gmra.mxu0 %vm247_vm0, %v229_v54  ;;  %796 = vmatpush.msra.mxu1 %v785_v22  ;;  %v781_v22 = vld [vmem:[%s2867_s4 + $0x40] sm:$0xff] }
  0x67   :  { %1760 = vmatmul.msk.f32.gmra.mxu1 %vm247_vm0, %v229_v54  ;;  %458 = vmatpush.msra.mxu0 %v412_v57 }
  0x68   :  { %1770 = vmatmul.msk.f32.gmra.mxu3 %vm247_vm0, %v208_v61  ;;  %v407_v61 = vld [vmem:[%s2863_s0 + $0xa] sm:$0xff]  ;;  %797 = vmatpush.msra.mxu1 %v784_v20  ;;  %v780_v20 = vld [vmem:[%s2867_s4 + $0x38] sm:$0xff] }
  0x6a   :  { %798 = vmatpush.msra.mxu1 %v783_v5 }
  0x6c   :  { %799 = vmatpush.msra.mxu1 %v782_v21 }
  0x6d   :  { %1782 = vmatmul.msk.f32.gmra.mxu2 %vm247_vm0, %v518_v60 }
  0x6e   :  { %1761 = vmatmul.msk.f32.vlgmr.msrb.gmra.mxu0 %vm247_vm0, %v2276_v52  ;;  %v519_v52 = vld [vmem:[%s2863_s0 + $0x13] sm:$0xff]  ;;  %800 = vmatpush.msra.mxu1 %v781_v22 }
  0x6f   :  { %1776 = vmatmul.msk.f32.vlgmr.msrb.gmra.mxu1 %vm247_vm0, %v406_v55 }
  0x70   :  { %1786 = vmatmul.msk.f32.vlgmr.msrb.gmra.mxu3 %vm247_vm0, %v517_v51  ;;  %801 = vmatpush.msra.mxu1 %v780_v20 }
  0x75   :  { %1783 = vmatmul.msk.f32.gmra.mxu2 %vm247_vm0, %v519_v52 }
  0x76   :  { %1762 = vmatmul.msk.f32.gmra.mxu0 %vm247_vm0, %v2288_v35  ;;  %v520_v35 = vld [vmem:[%s2863_s0 + $0x1b] sm:$0xff] }
  0x77   :  { %1777 = vmatmul.msk.f32.gmra.mxu1 %vm247_vm0, %v407_v61 }
  0x78   :  { %1787 = vmatmul.msk.f32.gmra.mxu3 %vm247_vm0, %v518_v60 }
  0x7d   :  { %1784 = vmatmul.msk.f32.gmra.mxu2 %vm247_vm0, %v520_v35 }
  0x7e   :  { %1763 = vmatmul.msk.f32.gmra.mxu0 %vm247_vm0, %v2304_v62  ;;  %v521_v62 = vld [vmem:[%s2863_s0 + $0x23] sm:$0x1f] }
  0x7f   :  { %1778 = vmatmul.msk.f32.gmra.mxu1 %vm247_vm0, %v408_v34 }
  0x80   :  { %1788 = vmatmul.msk.f32.gmra.mxu3 %vm247_vm0, %v519_v52 }
  0x85   :  { %1785 = vmatmul.msk.f32.gmra.mxu2 %vm247_vm0, %v521_v62 }
  0x86   :  { %1771 = vmatmul.msk.f32.vlgmr.msra.gmra.mxu0 %vm247_vm0, %v406_v55 }
  0x87   :  { %1779 = vmatmul.msk.f32.gmra.mxu1 %vm247_vm0, %v409_v58 }
  0x88   :  { %1789 = vmatmul.msk.f32.gmra.mxu3 %vm247_vm0, %v520_v35 }
  0x8e   :  { %1772 = vmatmul.msk.f32.gmra.mxu0 %vm247_vm0, %v407_v61 }
  0x8f   :  { %1780 = vmatmul.msk.f32.gmra.mxu1 %vm247_vm0, %v410_v53 }
  0x90   :  { %1790 = vmatmul.msk.f32.gmra.mxu3 %vm247_vm0, %v521_v62 }
  0x96   :  { %1773 = vmatmul.msk.f32.gmra.mxu0 %vm247_vm0, %v408_v34 }
  0x9e   :  { %1774 = vmatmul.msk.f32.gmra.mxu0 %vm247_vm0, %v409_v58 }
  0xa6   :  { %1775 = vmatmul.msk.f32.gmra.mxu0 %vm247_vm0, %v410_v53  ;;  %vm985_vm0 = vcmask 1042432  }
  0xc3   :  { %v2382_v36 = vpop.f32.mrf.mxu0 }
  0xc4   :  { %v312_v37 = vpop.f32.mrf.mxu1 }
  0xcb   :  { %v391_v59 = vpop.f32.mrf.mxu3  ;;  %v2384_v63 = vpop.f32.mrf.mxu0 }
  0xcc   :  { %v315_v54 = vpop.f32.mrf.mxu1  ;;  %v392_v5 = vadd.f32 %v391_v59, %v312_v37 }
  0xd3   :  { %v394_v56 = vpop.f32.mrf.mxu3  ;;  %v2386_v57 = vpop.f32.mrf.mxu0 }
  0xd4   :  { %v318_v51 = vpop.f32.mrf.mxu1  ;;  %v2392_v58 = vpop.f32.mrf.mxu2  ;;  %v395_v25 = vadd.f32 %v394_v56, %v315_v54  ;;  %v779_v54 = vld [vmem:[%s2867_s4 + $0x30] sm:$0xff] }
  0xd5   :  { %802 = vmatpush.msra.mxu1 %v779_v54 }
  0xdb   :  { %v397_v55 = vpop.f32.mrf.mxu3  ;;  %v2388_v60 = vpop.f32.mrf.mxu0 }
  0xdc   :  { %v321_v61 = vpop.f32.mrf.mxu1  ;;  %v2396_v38 = vpop.f32.mrf.mxu2  ;;  %v398_v7 = vadd.f32 %v397_v55, %v318_v51 }
  0xe3   :  { %v400_v52 = vpop.f32.mrf.mxu3  ;;  %v2390_v34 = vpop.f32.mrf.mxu0 }
  0xe4   :  { %v324_v35 = vpop.f32.mrf.mxu1 }
  0xe8   :  { %v2398_v1 = vpop.f32.mrf.mxu2 }
  0xeb   :  { %v403_v62 = vpop.f32.mrf.mxu3  ;;  %v2394_v53 = vpop.f32.mrf.mxu0 }
  0xec   :  { %v492_v17 = vpop.f32.mrf.mxu1  ;;  %v404_v56 = vadd.f32 %v403_v62, %v324_v35 }
  0xed   :  { %v508_v55 = vadd.f32 %v492_v17, %v392_v5  ;;  %v2456_v5 = vadd.s32 32, %v645_v24 }
  0xef   :  { %vm674_vm4 = vcmp.lt.s32.totalorder %v2456_v5, 37 }
  0xf0   :  { %v2414_v42 = vpop.f32.mrf.mxu2 }
  0xf3   :  { %v603_v0 = vpop.f32.mrf.mxu3  ;;  %v362_v18 = vpop.f32.mrf.mxu0 }
  0xf4   :  { %v495_v39 = vpop.f32.mrf.mxu1  ;;  %v363_v35 = vadd.f32 %v362_v18, %v2384_v63 }
  0xf5   :  { %v510_v21 = vadd.f32 %v495_v39, %v395_v25  ;;  %v777_v25 = vld [vmem:[%s2867_s4 + $0x20] sm:$0xff]  ;;  %v631_v39 = vperm.slane %v628_v23, 1 }
  0xf8   :  { %v577_v44 = vpop.f32.mrf.mxu2 }
  0xfb   :  { %v606_v19 = vpop.f32.mrf.mxu3  ;;  %v365_v2 = vpop.f32.mrf.mxu0 }
  0xfc   :  { %v498_v40 = vpop.f32.mrf.mxu1  ;;  %v621_v37 = vadd.f32 %v606_v19, %v510_v21  ;;  %v776_v19 = vld [vmem:[%s2867_s4 + $0x18] sm:$0xff]  ;;  %v369_v21 = vadd.f32 %v2392_v58, %v2388_v60  ;;  %v773_v60 = vld [vmem:[%s2867_s4] sm:$0xff] }
  0xfd   :  { %v512_v8 = vadd.f32 %v498_v40, %v398_v7  ;;  %v778_v7 = vld [vmem:[%s2867_s4 + $0x28] sm:$0xff]  ;;  %v401_v40 = vadd.f32 %v400_v52, %v321_v61  ;;  %v366_v61 = vadd.f32 %v365_v2, %v2386_v57  ;;  %v360_v52 = vadd.f32 %v2394_v53, %v2382_v36  ;;  %v775_v36 = vld [vmem:[%s2867_s4 + $0x10] sm:$0xff] }
  0xfe   :  { %803 = vmatpush.msra.mxu1 %v778_v7 }
 0x100   :  { %804 = vmatpush.msra.mxu1 %v777_v25  ;;  %v580_v53 = vpop.f32.mrf.mxu2 }
 0x102   :  { %805 = vmatpush.msra.mxu1 %v776_v19 }
 0x103   :  { %v609_v41 = vpop.f32.mrf.mxu3  ;;  %v2409_v4 = vpop.f32.mrf.mxu0 }
 0x104   :  { %v501_v3 = vpop.f32.mrf.mxu1  ;;  %v623_v51 = vadd.f32 %v609_v41, %v512_v8  ;;  %v619_v41 = vadd.f32 %v603_v0, %v508_v55  ;;  %v507_v24 = vadd.f32 %v2409_v4, %v360_v52  ;;  %806 = vmatpush.msra.mxu1 %v775_v36 }
 0x105   :  { %v514_v17 = vadd.f32 %v501_v3, %v401_v40  ;;  %v774_v3 = vld [vmem:[%s2867_s4 + $0x8] sm:$0xff] }
 0x106   :  { %v2454_v62 = vadd.f32 %v631_v39, %v623_v51  ;;  %v2469_v57 = vadd.f32 %v631_v39, %v619_v41  ;;  %807 = vmatpush.msra.mxu1 %v774_v3 }
 0x108   :  { %v735_v40 = vmul.f32 %v2469_v57, %v2469_v57  ;;  %808 = vmatpush.msra.mxu1 %v773_v60  ;;  %v718_v52 = vsel %vm717_vm5, %v2469_v57, 0.0 }
 0x10b   :  { %v612_v6 = vpop.f32.mrf.mxu3  ;;  %v463_v43 = vpop.f32.mrf.mxu0 }
 0x10c   :  { %v504_v45 = vpop.f32.mrf.mxu1  ;;  %v625_v2 = vadd.f32 %v612_v6, %v514_v17  ;;  %v509_v18 = vadd.f32 %v463_v43, %v363_v35  ;;  %v700_v6 = vsel %vm2462_vm3, %v2454_v62, 0.0  ;;  %v755_v35 = vsel %vm717_vm5, %v735_v40, 0.0 }
 0x10d   :  { %v516_v8 = vadd.f32 %v504_v45, %v404_v56  ;;  %v2458_v45 = vadd.f32 %v631_v39, %v621_v37  ;;  %v739_v55 = vmul.f32 %v700_v6, %v700_v6  ;;  %v618_v37 = vadd.f32 %v2398_v1, %v507_v24  ;;  %v583_v24 = vpop.f32.mrf.mxu2 }
 0x10e   :  { %v2485_v54 = vadd.f32 %v631_v39, %v625_v2  ;;  %v620_v56 = vadd.f32 %v2414_v42, %v509_v18  ;;  %v372_v1 = vadd.f32 %v2396_v38, %v2390_v34  ;;  %v721_v2 = vsel %vm717_vm5, %v700_v6, 0.0 }
 0x10f   :  { %v737_v4 = vmul.f32 %v2458_v45, %v2458_v45 }
 0x110   :  { %v741_v25 = vmul.f32 %v2485_v54, %v2485_v54  ;;  %v723_v3 = vsel %vm717_vm5, %v2485_v54, 0.0 }
 0x112   :  { %v760_v38 = vsel %vm717_vm5, %v741_v25, 0.0 }
 0x113   :  { %v615_v59 = vpop.f32.mrf.mxu3  ;;  %v466_v22 = vpop.f32.mrf.mxu0 }
 0x114   :  { %v627_v20 = vadd.f32 %v615_v59, %v516_v8  ;;  %v511_v63 = vadd.f32 %v466_v22, %v366_v61  ;;  %v630_v59 = vperm.slane %v628_v23, 0  ;;  %v789_v22 = vld [vmem:[%s2867_s4 + $0x80] sm:$0xff]  ;;  %v719_v23 = vsel %vm717_vm5, %v2458_v45, 0.0 }
 0x115   :  { %828 = vmatpush.msrb.mxu1 %v789_v22  ;;  %v758_v61 = vsel %vm717_vm5, %v739_v55, 0.0  ;;  %v720_v18 = vadd.f32 %v719_v23, %v718_v52 }
 0x116   :  { %v2480_v43 = vadd.f32 %v631_v39, %v627_v20  ;;  %v622_v51 = vadd.f32 %v577_v44, %v511_v63  ;;  %v756_v44 = vsel %vm717_vm5, %v737_v4, 0.0  ;;  %v2503_v39 = vadd.f32 %v630_v59, %v620_v56 }
 0x117   :  { %v2513_v17 = vadd.f32 %v630_v59, %v618_v37  ;;  %v757_v20 = vadd.f32 %v756_v44, %v755_v35  ;;  %v722_v4 = vadd.f32 %v721_v2, %v720_v18 }
 0x118   :  { %v704_v42 = vsel %vm674_vm4, %v2480_v43, 0.0  ;;  %v2505_v8 = vadd.f32 %v630_v59, %v622_v51  ;;  %v736_v34 = vmul.f32 %v2503_v39, %v2503_v39 }
 0x119   :  { %v743_v19 = vmul.f32 %v704_v42, %v704_v42  ;;  %v734_v56 = vmul.f32 %v2513_v17, %v2513_v17  ;;  %v705_v0 = vadd.f32 %v2503_v39, %v2513_v17  ;;  %v724_v40 = vadd.f32 %v723_v3, %v722_v4 }
 0x11a   :  { %v699_v63 = vsel %vm2462_vm3, %v2505_v8, 0.0  ;;  %v726_v37 = vsel %vm725_vm6, %v704_v42, 0.0  ;;  %vm1003_vm3 = vcmask 64519  }
 0x11b   :  { %v469_v7 = vpop.f32.mrf.mxu0  ;;  %v762_v51 = vsel %vm725_vm6, %v743_v19, 0.0  ;;  %v738_v60 = vmul.f32 %v699_v63, %v699_v63  ;;  %v744_v55 = vadd.f32 %v736_v34, %v734_v56  ;;  %v706_v44 = vadd.f32 %v705_v0, %v699_v63 }
 0x11c   :  { %v513_v58 = vadd.f32 %v469_v7, %v369_v21  ;;  %v727_v23 = vadd.f32 %v726_v37, %v724_v40 }
 0x11e   :  { %v624_v41 = vadd.f32 %v580_v53, %v513_v58  ;;  %v759_v53 = vadd.f32 %v758_v61, %v757_v20 }
 0x120   :  { %v2526_v21 = vadd.f32 %v630_v59, %v624_v41  ;;  %v761_v7 = vadd.f32 %v760_v38, %v759_v53  ;;  %v745_v41 = vadd.f32 %v744_v55, %v738_v60  ;;  %v728_v38 = vrot.slane %v727_v23, 4 }
 0x122   :  { %v763_v22 = vadd.f32 %v762_v51, %v761_v7  ;;  %v740_v25 = vmul.f32 %v2526_v21, %v2526_v21  ;;  %v707_v35 = vadd.f32 %v706_v44, %v2526_v21  ;;  %v729_v53 = vadd.f32 %v728_v38, %v727_v23  ;;  %v862_v38 = vld [vmem:[%s2868_s5] sm:$0xff] }
 0x123   :  { %v472_v36 = vpop.f32.mrf.mxu0  ;;  %882 = vmatpush.msra.mxu2 %v862_v38 }
 0x124   :  { %v515_v6 = vadd.f32 %v472_v36, %v372_v1  ;;  %v764_v42 = vrot.slane %v763_v22, 4  ;;  %v746_v20 = vadd.f32 %v745_v41, %v740_v25  ;;  %v730_v7 = vrot.slane %v729_v53, 2 }
 0x126   :  { %v626_v58 = vadd.f32 %v583_v24, %v515_v6  ;;  %v765_v63 = vadd.f32 %v764_v42, %v763_v22  ;;  %v731_v55 = vadd.f32 %v730_v7, %v729_v53 }
 0x128   :  { %v2536_v1 = vadd.f32 %v630_v59, %v626_v58  ;;  %v766_v4 = vrot.slane %v765_v63, 2  ;;  %v732_v41 = vrot.slane %v731_v55, 1 }
 0x12a   :  { %v703_v61 = vsel %vm674_vm4, %v2536_v1, 0.0  ;;  %v767_v40 = vadd.f32 %v766_v4, %v765_v63 }
 0x12b   :  { %v709_v19 = vsel %vm708_vm7, %v703_v61, 0.0  ;;  %v742_v52 = vmul.f32 %v703_v61, %v703_v61 }
 0x12c   :  { %v710_v2 = vadd.f32 %v709_v19, %v707_v35  ;;  %v768_v22 = vrot.slane %v767_v40, 1  ;;  %v733_v35 = vadd.f32 %v732_v41, %v731_v55 }
 0x12d   :  { %v747_v18 = vsel %vm708_vm7, %v742_v52, 0.0 }
 0x12e   :  { %v711_v34 = vrot.slane %v710_v2, 4  ;;  %v748_v59 = vadd.f32 %v747_v18, %v746_v20  ;;  %v769_v23 = vadd.f32 %v768_v22, %v767_v40 }
 0x130   :  { %v712_v36 = vadd.f32 %v711_v34, %v710_v2  ;;  %v749_v24 = vrot.slane %v748_v59, 4  ;;  %v772_v61 = vsel %vm770_vm8, %v733_v35, %v769_v23  ;;  %v863_v34 = vld [vmem:[%s2868_s5 + $0x8] sm:$0xff] }
 0x131   :  { %902 = vmatpush.msra.mxu3 %v863_v34 }
 0x132   :  { %v713_v3 = vrot.slane %v712_v36, 2  ;;  %v750_v6 = vadd.f32 %v749_v24, %v748_v59 }
 0x134   :  { %v714_v56 = vadd.f32 %v713_v3, %v712_v36  ;;  %v751_v51 = vrot.slane %v750_v6, 2 }
 0x136   :  { %v715_v0 = vrot.slane %v714_v56, 1  ;;  %v752_v60 = vadd.f32 %v751_v51, %v750_v6 }
 0x138   :  { %v753_v58 = vrot.slane %v752_v60, 1  ;;  %v716_v37 = vadd.f32 %v715_v0, %v714_v56  ;;  %v839_v56 = vld [vmem:[%s2866_s3] sm:$0x1] }
 0x13a   :  { %v754_v44 = vadd.f32 %v753_v58, %v752_v60  ;;  %v855_v60 = vld [vmem:[%s2866_s3 + $0x1] sm:$0x1] }
 0x13c   :  { %v771_v25 = vsel %vm770_vm8, %v716_v37, %v754_v44  ;;  %v1866_v44 = vmov 0.0  }
 0x13d   :  { %809 = vmatmul.f32.vlgmr.msra.gmra.mxu1 %v771_v25  ;;  %941 = vst [vmem:[#allocation2] sm:$0x3] %v1866_v44 }
 0x13e   :  { %943 = vst.msk [vmem:[#allocation2 + $0x8] sm:$0x3] %vm942_vm12, %v1866_v44 }
 0x13f   :  { %975 = vst [vmem:[#allocation2 + $0x20] sm:$0x18] %v1866_v44 }
 0x140   :  { %977 = vst.msk [vmem:[#allocation2 + $0x28] sm:$0x18] %vm976_vm13, %v1866_v44 }
 0x141   :  { %978 = vst [vmem:[#allocation2 + $0x20] sm:$0x60] %v1866_v44 }
 0x142   :  { %980 = vst.msk [vmem:[#allocation2 + $0x28] sm:$0x60] %vm979_vm14, %v1866_v44 }
 0x143   :  { %1009 = vst [vmem:[#allocation2 + $0x50] sm:$0x3] %v1866_v44 }
 0x144   :  { %1010 = vst.msk [vmem:[#allocation2 + $0x58] sm:$0x3] %vm942_vm12, %v1866_v44 }
 0x145   :  { %1791 = vmatmul.msk.f32.vlgmr.msrb.gmra.mxu1 %vm717_vm5, %v772_v61 }
 0x1ba   :  { %v810_v19 = vpop.f32.mrf.mxu1 }
 0x1c2   :  { %v830_v52 = vpop.f32.mrf.mxu1 }
 0x1c3   :  { %v831_v42 = vadd.f32 %v830_v52, %v810_v19 }
 0x1c5   :  { %v833_v20 = vmul.f32 0.0017301039, %v831_v42 }
 0x1c7   :  { %v834_v2 = vmul.f32 %v833_v20, %v833_v20 }
 0x1c9   :  { %v836_v18 = vrot.slane %v834_v2, 7 }
 0x1cb   :  { %v838_v59 = vsub.f32 %v833_v20, %v836_v18 }
 0x1cd   :  { %v840_v63 = vadd.f32 1e-05, %v838_v59 }
 0x1cf   :  { %1830 = vrsqrt.f32 %v840_v63  ;;  %vm847_vm10 = vweird.f32 %v840_v63 }
 0x1d5   :  { %v1831_v36 = vpop.eup %1830 }
 0x1d6   :  { %v842_v24 = vmul.f32 %v1831_v36, %v840_v63  ;;  %vm848_vm9 = vweird.f32 %v1831_v36 }
 0x1d7   :  { %vm849_vm11 = vmor %vm847_vm10, %vm848_vm9 }
 0x1d8   :  { %v843_v53 = vmul.f32 %v1831_v36, %v842_v24 }
 0x1da   :  { %v844_v3 = vmul.f32 0.5, %v843_v53 }
 0x1dc   :  { %v845_v6 = vsub.f32 1.5, %v844_v3 }
 0x1de   :  { %v846_v4 = vmul.f32 %v1831_v36, %v845_v6 }
 0x1e0   :  { %v850_v51 = vsel %vm849_vm11, %v1831_v36, %v846_v4 }
 0x1e1   :  { %v852_v7 = vrot.slane %v850_v51, 1 }
 0x1e3   :  { %v854_v0 = vmul.f32 %v852_v7, %v839_v56 }
 0x1e5   :  { %v856_v58 = vmul.f32 %v854_v0, %v833_v20 }
 0x1e7   :  { %v857_v40 = vsub.f32 %v855_v60, %v856_v58 }
 0x1e9   :  { %v859_v55 = vrot.slane %v857_v40, 7 }
 0x1eb   :  { %v861_v37 = vsel %vm770_vm8, %v854_v0, %v859_v55 }
 0x1ec   :  { %1792 = vmatmul.msk.f32.vlgmr.msra.gmra.mxu2 %vm717_vm5, %v861_v37  ;;  %1793 = vmatmul.msk.f32.vlgmr.msra.gmra.mxu3 %vm717_vm5, %v861_v37 }
 0x26f   :  { %v884_v25 = vpop.f32.mrf.mxu2  ;;  %v904_v22 = vpop.f32.mrf.mxu3 }
 0x270   :  { %v907_v41 = vperm.slane %v884_v25, 0  ;;  %v908_v23 = vperm.slane %v904_v22, 0  ;;  %v919_v35 = vperm.slane %v884_v25, 1  ;;  %v920_v61 = vperm.slane %v904_v22, 1 }
 0x272   :  { %v909_v19 = vmul.f32 %v907_v41, %v2513_v17  ;;  %v911_v52 = vmul.f32 %v907_v41, %v2503_v39  ;;  %v913_v42 = vmul.f32 %v907_v41, %v2505_v8  ;;  %v915_v20 = vmul.f32 %v907_v41, %v2526_v21 }
 0x273   :  { %v917_v2 = vmul.f32 %v907_v41, %v2536_v1  ;;  %v910_v18 = vmul.f32 %v908_v23, %v2469_v57  ;;  %v912_v38 = vmul.f32 %v908_v23, %v2458_v45  ;;  %v914_v34 = vmul.f32 %v908_v23, %v2454_v62 }
 0x274   :  { %v921_v59 = vadd.f32 %v919_v35, %v909_v19  ;;  %v923_v63 = vadd.f32 %v919_v35, %v911_v52  ;;  %v925_v36 = vadd.f32 %v919_v35, %v913_v42  ;;  %v927_v24 = vadd.f32 %v919_v35, %v915_v20 }
 0x275   :  { %v929_v53 = vadd.f32 %v919_v35, %v917_v2  ;;  %v916_v17 = vmul.f32 %v908_v23, %v2485_v54  ;;  %v918_v39 = vmul.f32 %v908_v23, %v2480_v43  ;;  %v922_v8 = vadd.f32 %v920_v61, %v910_v18 }
 0x276   :  { %v931_v3 = vmax.f32 %v921_v59, 0.0  ;;  %v933_v21 = vmax.f32 %v923_v63, 0.0  ;;  %v935_v6 = vmax.f32 %v925_v36, 0.0  ;;  %v937_v1 = vmax.f32 %v927_v24, 0.0 }
 0x277   :  { %v939_v4 = vmax.f32 %v929_v53, 0.0  ;;  %v924_v57 = vadd.f32 %v920_v61, %v912_v38  ;;  %v926_v56 = vadd.f32 %v920_v61, %v914_v34  ;;  %v928_v45 = vadd.f32 %v920_v61, %v916_v17 }
 0x278   :  { %v951_v51 = vrot.slane %v931_v3, 6  ;;  %v953_v62 = vrot.slane %v933_v21, 6  ;;  %v957_v7 = vrot.slane %v935_v6, 6  ;;  %v986_v0 = vrot.slane %v935_v6, 5 }
 0x279   :  { %v988_v60 = vrot.slane %v937_v1, 5  ;;  %v992_v58 = vrot.slane %v939_v4, 5  ;;  %v930_v40 = vadd.f32 %v920_v61, %v918_v39  ;;  %v932_v55 = vmax.f32 %v922_v8, 0.0 }
 0x27a   :  { %v954_v54 = vsel %vm950_vm15, %v951_v51, %v953_v62  ;;  %v958_v43 = vsel %vm950_vm15, %v953_v62, %v957_v7  ;;  %967 = vst [vmem:[#allocation2] sm:$0xfc] %v951_v51  ;;  %v934_v37 = vmax.f32 %v924_v57, 0.0  ;;  %v936_v44 = vmax.f32 %v926_v56, 0.0 }
 0x27b   :  { %970 = vst [vmem:[#allocation2 + $0x10] sm:$0xff] %v954_v54  ;;  %v989_v25 = vsel %vm985_vm0, %v986_v0, %v988_v60  ;;  %v938_v22 = vmax.f32 %v928_v45, 0.0  ;;  %v940_v41 = vmax.f32 %v930_v40, 0.0  ;;  %v993_v23 = vsel %vm985_vm0, %v988_v60, %v992_v58 }
 0x27c   :  { %972 = vst [vmem:[#allocation2 + $0x20] sm:$0x7] %v958_v43  ;;  %v952_v35 = vrot.slane %v932_v55, 6  ;;  %v955_v19 = vrot.slane %v934_v37, 6  ;;  %v959_v52 = vrot.slane %v936_v44, 6  ;;  %v987_v61 = vrot.slane %v936_v44, 5 }
 0x27d   :  { %1002 = vst [vmem:[#allocation2 + $0x20] sm:$0x80] %v986_v0  ;;  %v990_v42 = vrot.slane %v938_v22, 5  ;;  %v994_v2 = vrot.slane %v940_v41, 5 }
 0x27e   :  { %1005 = vst [vmem:[#allocation2 + $0x30] sm:$0xff] %v989_v25  ;;  %v956_v20 = vsel %vm950_vm15, %v952_v35, %v955_v19  ;;  %v960_v18 = vsel %vm950_vm15, %v955_v19, %v959_v52 }
 0x27f   :  { %1007 = vst [vmem:[#allocation2 + $0x40] sm:$0xff] %v993_v23  ;;  %v991_v38 = vsel %vm985_vm0, %v987_v61, %v990_v42  ;;  %v995_v34 = vsel %vm985_vm0, %v990_v42, %v994_v2 }
 0x280   :  { %969 = vst.msk [vmem:[#allocation2 + $0x8] sm:$0xfc] %vm968_vm1, %v952_v35 }
 0x281   :  { %971 = vst.msk [vmem:[#allocation2 + $0x18] sm:$0xff] %vm717_vm5, %v956_v20 }
 0x282   :  { %974 = vst.msk [vmem:[#allocation2 + $0x28] sm:$0x7] %vm973_vm2, %v960_v18 }
 0x283   :  { %1004 = vst.msk [vmem:[#allocation2 + $0x28] sm:$0x80] %vm1003_vm3, %v987_v61 }
 0x284   :  { %1006 = vst.msk [vmem:[#allocation2 + $0x38] sm:$0xff] %vm717_vm5, %v991_v38 }
 0x285   :  { %1008 = vst.msk [vmem:[#allocation2 + $0x48] sm:$0xff] %vm717_vm5, %v995_v34 }
 0x286   :  { %1861 = dma.done.wait [#allocation4], 8704 }
 0x287   :  { %1862 = vsyncadd [#allocation4], 4294958592  ;;  %1184 = vmatpush.msrb.mxu2 %v2008_v15  ;;  %1108 = vmatpush.msrb.mxu0 %v2093_v32  ;;  %v1016_v15 = vld [vmem:[#allocation2 + $0x8] sm:$0xff]  ;;  %vm1074_vm4 = vcmask 1046528   ;;  %v2926_v32 = vld [vmem:[#allocation28_spill] sm:$0xff]  ;;  %vm1290_vm6 = vcmask 1045504  }
 0x288   :  { %1231 = vmatpush.msrb.mxu3 %v2013_v16  ;;  %1155 = vmatpush.msra.mxu1 %v2098_v33  ;;  %v2596_v16 = vld [vmem:[#allocation2 + $0x18] sm:$0xff]  ;;  %v2928_v33 = vld [vmem:[#allocation39_spill] sm:$0xff]  ;;  %v2937_v24 = vld [vmem:[#allocation24_spill] sm:$0xff]  ;;  %vm1583_vm10 = vcmask 588800   ;;  %vm1557_vm11 = vcmp.lt.s32.totalorder %v2456_v5, 39  ;;  %vm1591_vm12 = vcmask 587776  }
 0x289   :  { %1185 = vmatpush.msrb.mxu2 %v2003_v14  ;;  %1109 = vmatpush.msrb.mxu0 %v2088_v31  ;;  %v1043_v14 = vld [vmem:[#allocation2 + $0x8] sm:$0xfe]  ;;  %v2936_v36 = vld [vmem:[#allocation37_spill] sm:$0xff]  ;;  %v2938_v53 = vld [vmem:[#allocation14_spill] sm:$0xff]  ;;  %vm1687_vm13 = vcmask 1043456   ;;  %vm1683_vm1 = vcmask 31744  }
 0x28a   :  { %1328 = vmatpush.msrb.mxu1 %v2178_v49  ;;  %1375 = vmatpush.msra.mxu3 %v2183_v50  ;;  %v2603_v31 = vld [vmem:[#allocation2 + $0x28] sm:$0xff]  ;;  %v2933_v49 = vld [vmem:[#allocation16_spill] sm:$0xff]  ;;  %v2934_v50 = vld [vmem:[#allocation25_spill] sm:$0xff]  ;;  %vm1732_vm2 = vcmask 588805  }
 0x28b   :  { %1186 = vmatpush.msrb.mxu2 %v1998_v13  ;;  %1110 = vmatpush.msrb.mxu0 %v2083_v30  ;;  %v1078_v13 = vrot.slane %v1043_v14, 1  ;;  %v1079_v30 = vrot.slane %v2596_v16, 1  ;;  %v2935_v59 = vld [vmem:[#allocation15_spill] sm:$0xff]  ;;  %v2939_v17 = vld [vmem:[#allocation36_spill] sm:$0xff]  ;;  %v1042_v3 = vld [vmem:[#allocation2] sm:$0xfe] }
 0x28c   :  { %1329 = vmatpush.msrb.mxu1 %v2173_v48  ;;  %1799 = vmatmul.msk.f32.vlgmr.msrb.gmra.mxu3 %vm717_vm5, %v1016_v15  ;;  %v2932_v48 = vld [vmem:[#allocation38_spill] sm:$0xff]  ;;  %v2940_v39 = vld [vmem:[#allocation23_spill] sm:$0xff]  ;;  %v2635_v8 = vld [vmem:[#allocation2 + $0x10] sm:$0xff]  ;;  %v1075_v45 = vrot.slane %v1042_v3, 1  ;;  %v1295_v14 = vrot.slane %v2596_v16, 2 }
 0x28d   :  { %1187 = vmatpush.msrb.mxu2 %v1993_v12  ;;  %1111 = vmatpush.msrb.mxu0 %v2078_v29  ;;  %v1080_v12 = vsel %vm1074_vm4, %v1078_v13, %v1079_v30  ;;  %v2925_v29 = vld [vmem:[#allocation40_spill] sm:$0xff]  ;;  %v2941_v21 = vld [vmem:[#allocation13_spill] sm:$0xff]  ;;  %v2942_v1 = vld [vmem:[#allocation22_spill] sm:$0xff]  ;;  %v1076_v51 = vrot.slane %v2635_v8, 1 }
 0x28e   :  { %1330 = vmatpush.msrb.mxu1 %v2168_v47  ;;  %v2622_v47 = vld [vmem:[#allocation2 + $0x38] sm:$0xff]  ;;  %v2642_v4 = vld [vmem:[#allocation2 + $0x48] sm:$0xff]  ;;  %v2944_v56 = vld [vmem:[#allocation12_spill] sm:$0xff] }
 0x28f   :  { %1188 = vmatpush.msrb.mxu2 %v1988_v11  ;;  %1112 = vmatpush.msrb.mxu0 %v2073_v28  ;;  %v1083_v11 = vrot.slane %v2603_v31, 1  ;;  %v2927_v28 = vld [vmem:[#allocation18_spill] sm:$0xff]  ;;  %v1087_v63 = vrot.slane %v2622_v47, 1  ;;  %v2943_v57 = vld [vmem:[#allocation35_spill] sm:$0xff]  ;;  %v2945_v62 = vld [vmem:[#allocation21_spill] sm:$0xff]  ;;  %v1091_v60 = vrot.slane %v2642_v4, 1  ;;  %v1077_v54 = vsel %vm1074_vm4, %v1075_v45, %v1076_v51 }
 0x290   :  { %1331 = vmatpush.msrb.mxu1 %v2163_v46  ;;  %v2929_v46 = vld [vmem:[#allocation27_spill] sm:$0xff]  ;;  %v1015_v0 = vld [vmem:[#allocation2] sm:$0xff]  ;;  %v2948_v40 = vld [vmem:[#allocation20_spill] sm:$0xff] }
 0x291   :  { %1189 = vmatpush.msrb.mxu2 %v1983_v10  ;;  %1113 = vmatpush.msrb.mxu0 %v2068_v27  ;;  %v2930_v10 = vld [vmem:[#allocation17_spill] sm:$0xff]  ;;  %v1084_v27 = vsel %vm1074_vm4, %v1079_v30, %v1083_v11  ;;  %v1088_v6 = vsel %vm1074_vm4, %v1083_v11, %v1087_v63  ;;  %v2946_v7 = vld [vmem:[#allocation11_spill] sm:$0xff]  ;;  %v2947_v58 = vld [vmem:[#allocation34_spill] sm:$0xff]  ;;  %v1092_v22 = vsel %vm1074_vm4, %v1087_v63, %v1091_v60 }
 0x292   :  { %1794 = vmatmul.msk.f32.vlgmr.msra.gmra.mxu1 %vm717_vm5, %v1080_v12  ;;  %v2949_v55 = vld [vmem:[#allocation10_spill] sm:$0xff]  ;;  %v2950_v43 = vld [vmem:[#allocation33_spill] sm:$0xff]  ;;  %v2951_v37 = vld [vmem:[#allocation19_spill] sm:$0xff] }
 0x293   :  { %1190 = vmatpush.msrb.mxu2 %v1978_v9  ;;  %1332 = vmatpush.msrb.mxu1 %v2925_v29  ;;  %v2931_v9 = vld [vmem:[#allocation26_spill] sm:$0xff]  ;;  %v2952_v25 = vld [vmem:[#allocation57_spill] sm:$0xff]  ;;  %v2953_v41 = vld [vmem:[#allocation32_spill] sm:$0xff] }
 0x294   :  { %1114 = vmatpush.msrb.mxu0 %v2926_v32  ;;  %1800 = vmatmul.msk.f32.gmra.mxu3 %vm717_vm5, %v2596_v16  ;;  %v2657_v44 = vld [vmem:[#allocation2 + $0x20] sm:$0xff]  ;;  %v2954_v23 = vld [vmem:[#allocation56_spill] sm:$0xff]  ;;  %v2955_v19 = vld [vmem:[#allocation55_spill] sm:$0xff] }
 0x295   :  { %1191 = vmatpush.msrb.mxu2 %v2927_v28  ;;  %1333 = vmatpush.msrb.mxu1 %v2928_v33  ;;  %v1081_v35 = vrot.slane %v2657_v44, 1  ;;  %v2956_v52 = vld [vmem:[#allocation31_spill] sm:$0xff]  ;;  %v2957_v42 = vld [vmem:[#allocation54_spill] sm:$0xff]  ;;  %v2673_v38 = vld [vmem:[#allocation2 + $0x30] sm:$0xff]  ;;  %v1292_v28 = vrot.slane %v2635_v8, 2 }
 0x296   :  { %1115 = vmatpush.msrb.mxu0 %v2929_v46  ;;  %v1024_v61 = vld [vmem:[#allocation2 + $0x48] sm:$0x7f]  ;;  %v2958_v18 = vld [vmem:[#allocation30_spill] sm:$0xff]  ;;  %v2959_v34 = vld [vmem:[#allocation53_spill] sm:$0xff]  ;;  %v1085_v11 = vrot.slane %v2673_v38, 1 }
 0x297   :  { %1192 = vmatpush.msrb.mxu2 %v2930_v10  ;;  %1334 = vmatpush.msrb.mxu1 %v2932_v48  ;;  %v1082_v20 = vsel %vm1074_vm4, %v1076_v51, %v1081_v35  ;;  %v1249_v2 = vld [vmem:[#allocation2 + $0x8] sm:$0xfc]  ;;  %v2960_v13 = vld [vmem:[#allocation29_spill] sm:$0xff]  ;;  %v1248_v30 = vld [vmem:[#allocation2] sm:$0xfc] }
 0x298   :  { %1116 = vmatpush.msrb.mxu0 %v2931_v9  ;;  %v1294_v15 = vrot.slane %v1249_v2, 2  ;;  %v2961_v12 = vld [vmem:[#allocation52_spill] sm:$0xff]  ;;  %v2962_v29 = vld [vmem:[#allocation51_spill] sm:$0xff]  ;;  %v1291_v32 = vrot.slane %v1248_v30, 2  ;;  %v1086_v46 = vsel %vm1074_vm4, %v1081_v35, %v1085_v11  ;;  %v2963_v10 = vld [vmem:[#allocation50_spill] sm:$0xff]  ;;  %v1431_v35 = vrot.slane %v2603_v31, 3 }
 0x299   :  { %1193 = vmatpush.msrb.mxu2 %v2933_v49  ;;  %1335 = vmatpush.msrb.mxu1 %v2936_v36  ;;  %v2964_v48 = vld [vmem:[#allocation49_spill] sm:$0xff]  ;;  %v1299_v49 = vrot.slane %v2603_v31, 2  ;;  %v2966_v63 = vld [vmem:[#allocation47_spill] sm:$0xff]  ;;  %v1297_v36 = vrot.slane %v2657_v44, 2 }
 0x29a   :  { %1117 = vmatpush.msrb.mxu0 %v2934_v50  ;;  %1795 = vmatmul.msk.f32.gmra.mxu1 %vm717_vm5, %v1084_v27  ;;  %v1296_v33 = vsel %vm1290_vm6, %v1294_v15, %v1295_v14  ;;  %v2688_v27 = vld [vmem:[#allocation2 + $0x40] sm:$0xff]  ;;  %v1293_v9 = vsel %vm1290_vm6, %v1291_v32, %v1292_v28  ;;  %v2965_v50 = vld [vmem:[#allocation48_spill] sm:$0xff]  ;;  %v2968_v3 = vld [vmem:[#allocation45_spill] sm:$0xff] }
 0x29b   :  { %1194 = vmatpush.msrb.mxu2 %v2935_v59  ;;  %1336 = vmatpush.msrb.mxu1 %v2939_v17  ;;  %v1089_v59 = vrot.slane %v2688_v27, 1  ;;  %v2967_v17 = vld [vmem:[#allocation46_spill] sm:$0xff]  ;;  %v1398_v51 = vld [vmem:[#allocation2 + $0x8] sm:$0xf8] }
 0x29c   :  { %1118 = vmatpush.msrb.mxu0 %v2937_v24  ;;  %1801 = vmatmul.msk.f32.gmra.mxu3 %vm717_vm5, %v2603_v31  ;;  %v1300_v24 = vsel %vm1290_vm6, %v1295_v14, %v1299_v49  ;;  %v1435_v31 = vrot.slane %v2622_v47, 3  ;;  %v1439_v14 = vrot.slane %v2642_v4, 3 }
 0x29d   :  { %1195 = vmatpush.msrb.mxu2 %v2938_v53  ;;  %1337 = vmatpush.msrb.mxu1 %v2943_v57  ;;  %v1090_v53 = vsel %vm1074_vm4, %v1085_v11, %v1089_v59  ;;  %v1301_v57 = vrot.slane %v2673_v38, 2 }
 0x29e   :  { %1119 = vmatpush.msrb.mxu0 %v2940_v39  ;;  %v1298_v39 = vsel %vm1290_vm6, %v1292_v28, %v1297_v36  ;;  %v1440_v30 = vsel %vm708_vm7, %v1435_v31, %v1439_v14 }
 0x29f   :  { %1196 = vmatpush.msrb.mxu2 %v2941_v21  ;;  %1338 = vmatpush.msrb.mxu1 %v2947_v58  ;;  %v1303_v21 = vrot.slane %v2622_v47, 2  ;;  %v1427_v58 = vrot.slane %v2596_v16, 3 }
 0x2a0   :  { %1120 = vmatpush.msrb.mxu0 %v2942_v1  ;;  %v1023_v1 = vld [vmem:[#allocation2 + $0x40] sm:$0x7f] }
 0x2a1   :  { %1197 = vmatpush.msrb.mxu2 %v2944_v56  ;;  %1339 = vmatpush.msrb.mxu1 %v2950_v43  ;;  %v2970_v56 = vld [vmem:[#allocation43_spill] sm:$0xff]  ;;  %v1304_v45 = vsel %vm1290_vm6, %v1299_v49, %v1303_v21  ;;  %v1424_v43 = vrot.slane %v2635_v8, 3 }
 0x2a2   :  { %1121 = vmatpush.msrb.mxu0 %v2945_v62  ;;  %1796 = vmatmul.msk.f32.gmra.mxu1 %vm717_vm5, %v1088_v6  ;;  %v2969_v6 = vld [vmem:[#allocation44_spill] sm:$0xff]  ;;  %v2971_v62 = vld [vmem:[#allocation42_spill] sm:$0xff] }
 0x2a3   :  { %1198 = vmatpush.msrb.mxu2 %v2946_v7  ;;  %1340 = vmatpush.msrb.mxu1 %v2953_v41  ;;  %v1397_v7 = vld [vmem:[#allocation2] sm:$0xf8] }
 0x2a4   :  { %1122 = vmatpush.msrb.mxu0 %v2948_v40  ;;  %1802 = vmatmul.msk.f32.gmra.mxu3 %vm717_vm5, %v2622_v47  ;;  %v2972_v40 = vld [vmem:[#allocation41_spill] sm:$0xff] }
 0x2a5   :  { %1199 = vmatpush.msrb.mxu2 %v2949_v55  ;;  %1341 = vmatpush.msrb.mxu1 %v2956_v52  ;;  %v1307_v55 = vrot.slane %v2642_v4, 2  ;;  %v1429_v52 = vrot.slane %v2657_v44, 3 }
 0x2a6   :  { %1200 = vmatmul.f32.vlgmr.msrb.gmra.mxu2 %v1015_v0  ;;  %1123 = vmatpush.msrb.mxu0 %v2951_v37  ;;  %v1302_v0 = vsel %vm1290_vm6, %v1297_v36, %v1301_v57 }
 0x2a7   :  { %1507 = vmatpush.msra.mxu2 %v2952_v25  ;;  %1124 = vmatmul.f32.vlgmr.msrb.gmra.mxu0 %v1077_v54  ;;  %v1423_v54 = vrot.slane %v1397_v7, 3  ;;  %v1305_v25 = vrot.slane %v2688_v27, 2  ;;  %v1430_v2 = vsel %vm708_vm7, %v1424_v43, %v1429_v52 }
 0x2a8   :  { %1460 = vmatpush.msra.mxu0 %v2954_v23  ;;  %1342 = vmatpush.msrb.mxu1 %v2958_v18  ;;  %v1259_v23 = vld [vmem:[#allocation2 + $0x58] sm:$0x1] }
 0x2a9   :  { %v1425_v41 = vsel %vm708_vm7, %v1423_v54, %v1424_v43  ;;  %v1306_v16 = vsel %vm1290_vm6, %v1301_v57, %v1305_v25 }
 0x2aa   :  { %1797 = vmatmul.msk.f32.gmra.mxu1 %vm717_vm5, %v1092_v22  ;;  %1461 = vmatpush.msra.mxu0 %v2955_v19  ;;  %v1308_v22 = vsel %vm1290_vm6, %v1303_v21, %v1307_v55  ;;  %v1258_v19 = vld [vmem:[#allocation2 + $0x50] sm:$0x1] }
 0x2ab   :  { %1343 = vmatpush.msrb.mxu1 %v2960_v13  ;;  %v1437_v13 = vrot.slane %v2688_v27, 3 }
 0x2ac   :  { %1462 = vmatpush.msra.mxu0 %v2957_v42  ;;  %1803 = vmatmul.msk.f32.gmra.mxu3 %vm717_vm5, %v1024_v61  ;;  %v1432_v61 = vsel %vm708_vm7, %v1427_v58, %v1431_v35  ;;  %v1309_v42 = vrot.slane %v1258_v19, 2 }
 0x2ae   :  { %1203 = vmatmul.f32.gmra.mxu2 %v2635_v8  ;;  %1463 = vmatpush.msra.mxu0 %v2959_v34  ;;  %v1311_v8 = vrot.slane %v1259_v23, 2  ;;  %v1310_v18 = vsel %vm1290_vm6, %v1305_v25, %v1309_v42  ;;  %v1433_v34 = vrot.slane %v2673_v38, 3  ;;  %v1624_v42 = vld [vmem:[%s2872_s9 + $0x18] sm:$0xff] }
 0x2af   :  { %1127 = vmatmul.f32.gmra.mxu0 %v1082_v20 }
 0x2b0   :  { %1464 = vmatpush.msra.mxu0 %v2961_v12  ;;  %v1312_v20 = vsel %vm1290_vm6, %v1307_v55, %v1311_v8  ;;  %v1434_v15 = vsel %vm708_vm7, %v1429_v52, %v1433_v34  ;;  %v1400_v12 = vld [vmem:[#allocation2 + $0x58] sm:$0x3]  ;;  %v1438_v47 = vsel %vm708_vm7, %v1433_v34, %v1437_v13 }
 0x2b1   :  { %v1443_v11 = vrot.slane %v1400_v12, 3 }
 0x2b2   :  { %1798 = vmatmul.msk.f32.gmra.mxu1 %vm717_vm5, %v1091_v60  ;;  %1465 = vmatpush.msra.mxu0 %v2962_v29  ;;  %v1426_v60 = vrot.slane %v1398_v51, 3  ;;  %v1629_v51 = vld [vmem:[%s2872_s9 + $0x40] sm:$0xff] }
 0x2b3   :  { %v1444_v32 = vsel %vm708_vm7, %v1439_v14, %v1443_v11  ;;  %1640 = vmatpush.msra.mxu1 %v1629_v51 }
 0x2b4   :  { %1466 = vmatpush.msra.mxu0 %v2963_v10  ;;  %1804 = vmatmul.msk.f32.vlgmr.msra.gmra.mxu3 %vm717_vm5, %v1296_v33  ;;  %v1428_v37 = vsel %vm708_vm7, %v1426_v60, %v1427_v58  ;;  %v1627_v58 = vld [vmem:[%s2872_s9 + $0x30] sm:$0xff] }
 0x2b6   :  { %1206 = vmatmul.f32.gmra.mxu2 %v2657_v44  ;;  %1467 = vmatpush.msra.mxu0 %v2964_v48  ;;  %v1436_v44 = vsel %vm708_vm7, %v1431_v35, %v1435_v31  ;;  %v1625_v35 = vld [vmem:[%s2872_s9 + $0x20] sm:$0xff] }
 0x2b7   :  { %1130 = vmatmul.f32.gmra.mxu0 %v1086_v46 }
 0x2b8   :  { %1468 = vmatpush.msra.mxu0 %v2965_v50 }
 0x2ba   :  { %1344 = vmatmul.f32.vlgmr.msrb.gmra.mxu1 %v1293_v9  ;;  %1469 = vmatpush.msra.mxu0 %v2966_v63 }
 0x2bc   :  { %1470 = vmatpush.msra.mxu0 %v2967_v17  ;;  %1805 = vmatmul.msk.f32.gmra.mxu3 %vm717_vm5, %v1300_v24 }
 0x2be   :  { %1209 = vmatmul.f32.gmra.mxu2 %v2673_v38  ;;  %1471 = vmatpush.msra.mxu0 %v2968_v3  ;;  %v1399_v38 = vld [vmem:[#allocation2 + $0x50] sm:$0x3] }
 0x2bf   :  { %1133 = vmatmul.f32.gmra.mxu0 %v1090_v53  ;;  %v1441_v29 = vrot.slane %v1399_v38, 3  ;;  %v1622_v38 = vld [vmem:[%s2872_s9 + $0x8] sm:$0xff] }
 0x2c0   :  { %1472 = vmatpush.msra.mxu0 %v2969_v6 }
 0x2c1   :  { %v1442_v28 = vsel %vm708_vm7, %v1437_v13, %v1441_v29  ;;  %vm1550_vm7 = vcmp.ge.s32.totalorder %v2431_v26, 21 }
 0x2c2   :  { %1347 = vmatmul.f32.gmra.mxu1 %v1298_v39  ;;  %1473 = vmatpush.msra.mxu0 %v2970_v56 }
 0x2c4   :  { %1474 = vmatpush.msra.mxu0 %v2971_v62  ;;  %1806 = vmatmul.msk.f32.gmra.mxu3 %vm717_vm5, %v1304_v45  ;;  %v1628_v62 = vld [vmem:[%s2872_s9 + $0x38] sm:$0xff] }
 0x2c5   :  { %1641 = vmatpush.msra.mxu1 %v1628_v62 }
 0x2c6   :  { %1212 = vmatmul.f32.gmra.mxu2 %v1023_v1  ;;  %1475 = vmatpush.msra.mxu0 %v2972_v40 }
 0x2c7   :  { %1136 = vmatmul.f32.gmra.mxu0 %v1089_v59  ;;  %1642 = vmatpush.msra.mxu1 %v1627_v58 }
 0x2ca   :  { %1350 = vmatmul.f32.gmra.mxu1 %v1302_v0 }
 0x2cc   :  { %1807 = vmatmul.msk.f32.gmra.mxu3 %vm717_vm5, %v1308_v22 }
 0x2ce   :  { %1809 = vmatmul.msk.f32.vlgmr.msra.gmra.mxu2 %vm717_vm5, %v1428_v37 }
 0x2cf   :  { %1476 = vmatmul.f32.vlgmr.msra.gmra.mxu0 %v1425_v41 }
 0x2d2   :  { %1353 = vmatmul.f32.gmra.mxu1 %v1306_v16  ;;  %v1626_v16 = vld [vmem:[%s2872_s9 + $0x28] sm:$0xff] }
 0x2d3   :  { %1643 = vmatpush.msra.mxu1 %v1626_v16 }
 0x2d4   :  { %1808 = vmatmul.msk.f32.gmra.mxu3 %vm717_vm5, %v1312_v20 }
 0x2d5   :  { %1644 = vmatpush.msra.mxu1 %v1625_v35 }
 0x2d6   :  { %1810 = vmatmul.msk.f32.gmra.mxu2 %vm717_vm5, %v1432_v61 }
 0x2d7   :  { %1479 = vmatmul.f32.gmra.mxu0 %v1430_v2  ;;  %1645 = vmatpush.msra.mxu1 %v1624_v42 }
 0x2da   :  { %1356 = vmatmul.f32.gmra.mxu1 %v1310_v18 }
 0x2de   :  { %1811 = vmatmul.msk.f32.gmra.mxu2 %vm717_vm5, %v1436_v44 }
 0x2df   :  { %1482 = vmatmul.f32.gmra.mxu0 %v1434_v15  ;;  %v1623_v15 = vld [vmem:[%s2872_s9 + $0x10] sm:$0xff] }
 0x2e0   :  { %1646 = vmatpush.msra.mxu1 %v1623_v15 }
 0x2e2   :  { %1647 = vmatpush.msra.mxu1 %v1622_v38 }
 0x2e6   :  { %1812 = vmatmul.msk.f32.gmra.mxu2 %vm717_vm5, %v1440_v30 }
 0x2e7   :  { %1485 = vmatmul.f32.gmra.mxu0 %v1438_v47 }
 0x2ee   :  { %1813 = vmatmul.msk.f32.gmra.mxu2 %vm717_vm5, %v1444_v32  ;;  %vm1540_vm5 = vcmp.lt.s32.totalorder %v2431_v26, 18 }
 0x2ef   :  { %1488 = vmatmul.f32.gmra.mxu0 %v1442_v28  ;;  %vm1565_vm9 = vmor %vm1540_vm5, %vm1550_vm7 }
 0x30f   :  { %v1157_v4 = vpop.f32.mrf.mxu1  ;;  %v2745_v33 = vpop.f32.mrf.mxu3 }
 0x317   :  { %v1160_v46 = vpop.f32.mrf.mxu1  ;;  %v1236_v10 = vpop.f32.mrf.mxu3 }
 0x31f   :  { %v1163_v27 = vpop.f32.mrf.mxu1  ;;  %v1239_v9 = vpop.f32.mrf.mxu3 }
 0x324   :  { %v1125_v48 = vpop.f32.mrf.mxu0 }
 0x325   :  { %v1158_v22 = vadd.f32 %v1157_v4, %v1125_v48 }
 0x327   :  { %v1166_v59 = vpop.f32.mrf.mxu1  ;;  %v2747_v63 = vpop.f32.mrf.mxu3 }
 0x329   :  { %v1201_v49 = vpop.f32.mrf.mxu2 }
 0x32a   :  { %v1202_v20 = vadd.f32 %v1201_v49, %v1158_v22 }
 0x32c   :  { %v1128_v50 = vpop.f32.mrf.mxu0  ;;  %v1234_v11 = vadd.f32 %v2745_v33, %v1202_v20  ;;  %v1832_v33 = vld [vmem:[%s2870_s7] ss:$0 sm:$0xff] }
 0x32d   :  { %v1161_v25 = vadd.f32 %v1160_v46, %v1128_v50 }
 0x32f   :  { %v2749_v53 = vpop.f32.mrf.mxu1  ;;  %v2751_v17 = vpop.f32.mrf.mxu3 }
 0x331   :  { %v1204_v36 = vpop.f32.mrf.mxu2 }
 0x332   :  { %v1205_v8 = vadd.f32 %v1204_v36, %v1161_v25 }
 0x334   :  { %v1131_v24 = vpop.f32.mrf.mxu0  ;;  %v1237_v14 = vadd.f32 %v1236_v10, %v1205_v8  ;;  %v1621_v10 = vld [vmem:[%s2872_s9] sm:$0xff] }
 0x335   :  { %v1164_v37 = vadd.f32 %v1163_v27, %v1131_v24  ;;  %1648 = vmatpush.msra.mxu1 %v1621_v10 }
 0x337   :  { %v1345_v6 = vpop.f32.mrf.mxu1  ;;  %v1377_v1 = vpop.f32.mrf.mxu3 }
 0x338   :  { %v1378_v13 = vadd.f32 %v1377_v1, %v1345_v6 }
 0x339   :  { %v1207_v39 = vpop.f32.mrf.mxu2 }
 0x33a   :  { %v1208_v23 = vadd.f32 %v1207_v39, %v1164_v37  ;;  %v1392_v27 = vadd.f32 %v1378_v13, %v1234_v11 }
 0x33c   :  { %v1134_v3 = vpop.f32.mrf.mxu0  ;;  %v1240_v34 = vadd.f32 %v1239_v9, %v1208_v23 }
 0x33d   :  { %v1167_v19 = vadd.f32 %v1166_v59, %v1134_v3 }
 0x33f   :  { %v1348_v45 = vpop.f32.mrf.mxu1  ;;  %v1380_v7 = vpop.f32.mrf.mxu3 }
 0x340   :  { %v1381_v2 = vadd.f32 %v1380_v7, %v1348_v45 }
 0x341   :  { %v1210_v21 = vpop.f32.mrf.mxu2 }
 0x342   :  { %v1211_v12 = vadd.f32 %v1210_v21, %v1167_v19  ;;  %v1393_v29 = vadd.f32 %v1381_v2, %v1237_v14 }
 0x344   :  { %v1137_v57 = vpop.f32.mrf.mxu0  ;;  %v1243_v48 = vadd.f32 %v2747_v63, %v1211_v12 }
 0x345   :  { %v1170_v49 = vadd.f32 %v2749_v53, %v1137_v57 }
 0x347   :  { %v1351_v55 = vpop.f32.mrf.mxu1  ;;  %v1383_v54 = vpop.f32.mrf.mxu3 }
 0x348   :  { %v1384_v52 = vadd.f32 %v1383_v54, %v1351_v55 }
 0x349   :  { %v2753_v56 = vpop.f32.mrf.mxu2 }
 0x34a   :  { %v1394_v47 = vadd.f32 %v1384_v52, %v1240_v34  ;;  %v1214_v53 = vadd.f32 %v2753_v56, %v1170_v49  ;;  %v1682_v49 = vld [vmem:[%s2873_s10] sm:$0xf] }
 0x34b   :  { %1815 = vmatpush.msk.msrb.mxu3 %vm1687_vm13, %v1682_v49 }
 0x34c   :  { %v1477_v0 = vpop.f32.mrf.mxu0  ;;  %v1246_v7 = vadd.f32 %v2751_v17, %v1214_v53 }
 0x34f   :  { %v1354_v61 = vpop.f32.mrf.mxu1  ;;  %v1386_v18 = vpop.f32.mrf.mxu3 }
 0x350   :  { %v1387_v4 = vadd.f32 %v1386_v18, %v1354_v61 }
 0x351   :  { %v1509_v60 = vpop.f32.mrf.mxu2 }
 0x352   :  { %v1510_v32 = vadd.f32 %v1509_v60, %v1477_v0  ;;  %v1395_v36 = vadd.f32 %v1387_v4, %v1243_v48 }
 0x354   :  { %v1480_v40 = vpop.f32.mrf.mxu0  ;;  %v1524_v50 = vadd.f32 %v1510_v32, %v1392_v27 }
 0x356   :  { %v2795_v1 = vadd.f32 %v1832_v33, %v1524_v50 }
 0x357   :  { %v1357_v63 = vpop.f32.mrf.mxu1  ;;  %v1389_v21 = vpop.f32.mrf.mxu3 }
 0x358   :  { %v1390_v57 = vadd.f32 %v1389_v21, %v1357_v63  ;;  %v1600_v0 = vmul.f32 %v2795_v1, %v2795_v1  ;;  %v1584_v54 = vsel %vm1583_vm10, %v2795_v1, 0.0 }
 0x359   :  { %v1512_v43 = vpop.f32.mrf.mxu2 }
 0x35a   :  { %v1513_v30 = vadd.f32 %v1512_v43, %v1480_v40  ;;  %v1396_v40 = vadd.f32 %v1390_v57, %v1246_v7 }
 0x35c   :  { %v1483_v41 = vpop.f32.mrf.mxu0  ;;  %v1525_v9 = vadd.f32 %v1513_v30, %v1393_v29 }
 0x35e   :  { %v2792_v3 = vadd.f32 %v1832_v33, %v1525_v9 }
 0x360   :  { %v1601_v45 = vmul.f32 %v2792_v3, %v2792_v3  ;;  %v1585_v56 = vsel %vm1583_vm10, %v2792_v3, 0.0 }
 0x361   :  { %v1515_v31 = vpop.f32.mrf.mxu2  ;;  %v1586_v25 = vadd.f32 %v1585_v56, %v1584_v54 }
 0x362   :  { %v1516_v44 = vadd.f32 %v1515_v31, %v1483_v41  ;;  %v1606_v43 = vsel %vm1583_vm10, %v1601_v45, 0.0  ;;  %v1605_v41 = vsel %vm1583_vm10, %v1600_v0, 0.0 }
 0x363   :  { %v1607_v35 = vadd.f32 %v1606_v43, %v1605_v41 }
 0x364   :  { %v1486_v28 = vpop.f32.mrf.mxu0  ;;  %v1526_v46 = vadd.f32 %v1516_v44, %v1394_v47 }
 0x366   :  { %v2790_v24 = vadd.f32 %v1832_v33, %v1526_v46 }
 0x368   :  { %v1580_v26 = vsel %vm1565_vm9, %v2790_v24, 0.0 }
 0x369   :  { %v1518_v59 = vpop.f32.mrf.mxu2  ;;  %v1602_v60 = vmul.f32 %v1580_v26, %v1580_v26  ;;  %v1587_v37 = vsel %vm1583_vm10, %v1580_v26, 0.0 }
 0x36a   :  { %v1519_v39 = vadd.f32 %v1518_v59, %v1486_v28  ;;  %v1588_v8 = vadd.f32 %v1587_v37, %v1586_v25 }
 0x36b   :  { %v1608_v23 = vsel %vm1583_vm10, %v1602_v60, 0.0 }
 0x36c   :  { %v1527_v6 = vadd.f32 %v1519_v39, %v1395_v36  ;;  %v1489_v62 = vpop.f32.mrf.mxu0  ;;  %v1609_v61 = vadd.f32 %v1608_v23, %v1607_v35 }
 0x36e   :  { %v2800_v51 = vadd.f32 %v1832_v33, %v1527_v6  ;;  %v1659_v6 = vld [vmem:[%s2871_s8] sm:$0x1] }
 0x370   :  { %v1603_v17 = vmul.f32 %v2800_v51, %v2800_v51  ;;  %v1589_v16 = vsel %vm1583_vm10, %v2800_v51, 0.0 }
 0x371   :  { %v1521_v58 = vpop.f32.mrf.mxu2  ;;  %v1590_v42 = vadd.f32 %v1589_v16, %v1588_v8 }
 0x372   :  { %v1522_v55 = vadd.f32 %v1521_v58, %v1489_v62  ;;  %v1610_v52 = vsel %vm1583_vm10, %v1603_v17, 0.0  ;;  %v1675_v62 = vld [vmem:[%s2871_s8 + $0x1] sm:$0x1] }
 0x373   :  { %v1611_v31 = vadd.f32 %v1610_v52, %v1609_v61 }
 0x374   :  { %v1528_v22 = vadd.f32 %v1522_v55, %v1396_v40 }
 0x376   :  { %v2818_v19 = vadd.f32 %v1832_v33, %v1528_v22 }
 0x378   :  { %v1582_v20 = vsel %vm1557_vm11, %v2818_v19, 0.0 }
 0x379   :  { %v1592_v2 = vsel %vm1591_vm12, %v1582_v20, 0.0  ;;  %v1604_v18 = vmul.f32 %v1582_v20, %v1582_v20 }
 0x37a   :  { %v1593_v34 = vadd.f32 %v1592_v2, %v1590_v42 }
 0x37b   :  { %v1612_v44 = vsel %vm1591_vm12, %v1604_v18, 0.0 }
 0x37c   :  { %v1594_v15 = vrot.slane %v1593_v34, 4  ;;  %v1613_v5 = vadd.f32 %v1612_v44, %v1611_v31 }
 0x37e   :  { %v1595_v14 = vadd.f32 %v1594_v15, %v1593_v34  ;;  %v1614_v13 = vrot.slane %v1613_v5, 4 }
 0x380   :  { %v1596_v30 = vrot.slane %v1595_v14, 2  ;;  %v1615_v12 = vadd.f32 %v1614_v13, %v1613_v5 }
 0x382   :  { %v1597_v47 = vadd.f32 %v1596_v30, %v1595_v14  ;;  %v1616_v38 = vrot.slane %v1615_v12, 2 }
 0x384   :  { %v1598_v11 = vrot.slane %v1597_v47, 1  ;;  %v1617_v29 = vadd.f32 %v1616_v38, %v1615_v12 }
 0x386   :  { %v1618_v32 = vrot.slane %v1617_v29, 1  ;;  %v1599_v28 = vadd.f32 %v1598_v11, %v1597_v47 }
 0x388   :  { %v1619_v4 = vadd.f32 %v1618_v32, %v1617_v29 }
 0x38a   :  { %v1620_v46 = vsel %vm770_vm8, %v1599_v28, %v1619_v4 }
 0x38b   :  { %1814 = vmatmul.msk.f32.vlgmr.msra.gmra.mxu1 %vm1583_vm10, %v1620_v46 }
 0x408   :  { %v1650_v10 = vpop.f32.mrf.mxu1 }
 0x409   :  { %v1653_v27 = vmul.f32 0.0015432099, %v1650_v10 }
 0x40b   :  { %v1654_v9 = vmul.f32 %v1653_v27, %v1653_v27 }
 0x40d   :  { %v1656_v48 = vrot.slane %v1654_v9, 7 }
 0x40f   :  { %v1658_v33 = vsub.f32 %v1653_v27, %v1656_v48 }
 0x411   :  { %v1660_v50 = vadd.f32 1e-05, %v1658_v33 }
 0x413   :  { %1833 = vrsqrt.f32 %v1660_v50  ;;  %vm1667_vm15 = vweird.f32 %v1660_v50 }
 0x419   :  { %v1834_v59 = vpop.eup %1833 }
 0x41a   :  { %v1662_v36 = vmul.f32 %v1834_v59, %v1660_v50  ;;  %vm1668_vm14 = vweird.f32 %v1834_v59 }
 0x41b   :  { %vm1669_vm0 = vmor %vm1667_vm15, %vm1668_vm14 }
 0x41c   :  { %v1663_v39 = vmul.f32 %v1834_v59, %v1662_v36 }
 0x41e   :  { %v1664_v63 = vmul.f32 0.5, %v1663_v39 }
 0x420   :  { %v1665_v21 = vsub.f32 1.5, %v1664_v63 }
 0x422   :  { %v1666_v53 = vmul.f32 %v1834_v59, %v1665_v21 }
 0x424   :  { %v1670_v57 = vsel %vm1669_vm0, %v1834_v59, %v1666_v53 }
 0x425   :  { %v1672_v26 = vrot.slane %v1670_v57, 1 }
 0x427   :  { %v1674_v45 = vmul.f32 %v1672_v26, %v1659_v6 }
 0x429   :  { %v1676_v7 = vmul.f32 %v1674_v45, %v1653_v27 }
 0x42b   :  { %v1677_v0 = vsub.f32 %v1675_v62, %v1676_v7 }
 0x42d   :  { %v1679_v56 = vrot.slane %v1677_v0, 7 }
 0x42f   :  { %v1681_v60 = vsel %vm770_vm8, %v1674_v45, %v1679_v56  ;;  %vm1730_vm8 = vcmask 582656  }
 0x430   :  { %1816 = vmatmul.msk.f32.vlgmr.msrb.gmra.mxu3 %vm1683_vm1, %v1681_v60 }
 0x4b3   :  { %v1708_v58 = vpop.f32.mrf.mxu3 }
 0x4b4   :  { %v1711_v40 = vperm.slane %v1708_v58, 0  ;;  %v1717_v55 = vperm.slane %v1708_v58, 1 }
 0x4b6   :  { %v1712_v54 = vmul.f32 %v1711_v40, %v2795_v1  ;;  %v1713_v43 = vmul.f32 %v1711_v40, %v2792_v3  ;;  %v1714_v37 = vmul.f32 %v1711_v40, %v2790_v24  ;;  %v1715_v17 = vmul.f32 %v1711_v40, %v2800_v51 }
 0x4b7   :  { %v1716_v25 = vmul.f32 %v1711_v40, %v2818_v19 }
 0x4b8   :  { %v1718_v22 = vadd.f32 %v1717_v55, %v1712_v54  ;;  %v1719_v41 = vadd.f32 %v1717_v55, %v1713_v43  ;;  %v1720_v23 = vadd.f32 %v1717_v55, %v1714_v37  ;;  %v1721_v16 = vadd.f32 %v1717_v55, %v1715_v17 }
 0x4b9   :  { %v1722_v35 = vadd.f32 %v1717_v55, %v1716_v25 }
 0x4ba   :  { %v1723_v8 = vmax.f32 %v1718_v22, 0.0  ;;  %v1724_v52 = vmax.f32 %v1719_v41, 0.0  ;;  %v1725_v61 = vmax.f32 %v1720_v23, 0.0  ;;  %v1726_v42 = vmax.f32 %v1721_v16, 0.0 }
 0x4bb   :  { %v1727_v24 = vmax.f32 %v1722_v35, 0.0 }
 0x4bc   :  { %1728 = vst.msk [vmem:[%s2874_s11] sm:$0xff] %vm1583_vm10, %v1723_v8 }
 0x4bd   :  { %1729 = vst.msk [vmem:[%s2874_s11 + $0x8] sm:$0xff] %vm1583_vm10, %v1724_v52 }
 0x4be   :  { %1731 = vst.msk [vmem:[%s2874_s11 + $0x10] sm:$0x3] %vm1730_vm8, %v1725_v61 }
 0x4bf   :  { %1733 = vst.msk [vmem:[%s2874_s11 + $0xd] sm:$0xe0] %vm1732_vm2, %v1725_v61 }
 0x4c0   :  { %1734 = vst.msk [vmem:[%s2874_s11 + $0x15] sm:$0xff] %vm1583_vm10, %v1726_v42 }
 0x4c1   :  { %1735 = vst.msk [vmem:[%s2874_s11 + $0x1d] sm:$0x7f] %vm1591_vm12, %v1727_v24 }
 0x4c2   :  { %1740 = vsyncpa [#allocation6], 1 }
 0x4c3   :  { %1741 = vsyncmov [#allocation4] }
 0x4c6   :  { %s1742_s6 = vpop.sfrf %1741 }
 0x4c7   :  { %p1817_p0 = scmp.ne.s32.totalorder %s1742_s6, 0 }
 0x4c9   :  { %1746 = shalt.err (%p1817_p0)  }

</bundles_post_ra>
